<compile_context>
chip_gen: v7x
topology: tpu7x:2x2x1
jax: 0.10.0
libtpu: 0.0.40
codegen_flags: <defaults>
</compile_context>

<pallas_src>
import functools
import math

import jax
import jax.numpy as jnp
from jax.experimental import pallas as pl
from jax.experimental.pallas import tpu as pltpu

# ----- small, module-consistent config ---------------------------------------
B = 2             # batch
N = 8             # sequence length (regions / tokens)
HIDDEN = 32       # __C.HIDDEN_SIZE
MULTI_HEAD = 8    # __C.MULTI_HEAD
D = HIDDEN // MULTI_HEAD
FF = 4 * HIDDEN   # __C.FF_SIZE
LN_EPS = 1e-6     # openvqa LayerNorm eps (added to std, unbiased std)


# ----- fused SA kernel: MHAtt (v = k) + merge + LN1 + FFN + LN2 ----------------
def sa_kernel(y_ref, mask_ref,
              wk, bk, wq, bq, wm, bm,
              w1, b1, w2, b2,
              g1, be1, g2, be2,
              o_ref, ctx_ref, *, n_heads, d_k, eps):
    y = y_ref[0]                    # (N, H)  lane-dense
    maskrow = mask_ref[0]           # (1, N)  float, 1.0 == masked key position
    neg = jnp.float32(-1e9)

    # projections (single K=32 MXU matmuls)
    kp = jnp.dot(y, wk[...], preferred_element_type=jnp.float32) + bk[...]
    qp = jnp.dot(y, wq[...], preferred_element_type=jnp.float32) + bq[...]

    inv_sqrt_d = 1.0 / math.sqrt(d_k)
    # per-head attention, unrolled in-kernel on static lane slices; v = k (per module)
    for h in range(n_heads):
        sl = slice(h * d_k, (h + 1) * d_k)
        qh = qp[:, sl]                                    # (N, D)
        kh = kp[:, sl]                                    # (N, D)
        s = jnp.dot(qh, kh.T, preferred_element_type=jnp.float32) * inv_sqrt_d
        s = jnp.where(maskrow > 0.5, neg, s)              # mask key positions
        m = jnp.max(s, axis=-1, keepdims=True)
        e = jnp.exp(s - m)
        att = e / jnp.sum(e, axis=-1, keepdims=True)
        # TODO(synk): dropout on the attention map skipped (inference semantics).
        ctx_ref[:, sl] = jnp.dot(att, kh, preferred_element_type=jnp.float32)

    # linear_merge as one (N,32)@(32,32) matmul on the concatenated heads
    atted = jnp.dot(ctx_ref[...], wm[...], preferred_element_type=jnp.float32) + bm[...]

    # residual + LayerNorm1 (PyTorch-style: unbiased std, eps added to std)
    x = y + atted
    mu = jnp.mean(x, axis=-1, keepdims=True)
    xc = x - mu
    std = jnp.sqrt(jnp.sum(xc * xc, axis=-1, keepdims=True) / (x.shape[-1] - 1))
    x = g1[...] * xc / (std + eps) + be1[...]

    # FFN: Linear(H, FF) -> ReLU -> (dropout identity) -> Linear(FF, H)
    hmid = jnp.maximum(
        jnp.dot(x, w1[...], preferred_element_type=jnp.float32) + b1[...], 0.0)
    ff = jnp.dot(hmid, w2[...], preferred_element_type=jnp.float32) + b2[...]

    # residual + LayerNorm2
    x2 = x + ff
    mu2 = jnp.mean(x2, axis=-1, keepdims=True)
    xc2 = x2 - mu2
    std2 = jnp.sqrt(jnp.sum(xc2 * xc2, axis=-1, keepdims=True) / (x2.shape[-1] - 1))
    o_ref[0] = g2[...] * xc2 / (std2 + eps) + be2[...]


# ----- wrapper: one fused pallas_call, grid over batch only --------------------
def sa_pallas(params, y, y_mask):
    mask_f = y_mask.reshape(B, 1, N).astype(jnp.float32)   # (B, 1, N), 1.0 = masked

    per_batch = lambda b: (b, 0, 0)
    full2 = lambda b: (0, 0)

    kernel = functools.partial(sa_kernel, n_heads=MULTI_HEAD, d_k=D, eps=LN_EPS)

    return pl.pallas_call(
        kernel,
        out_shape=jax.ShapeDtypeStruct((B, N, HIDDEN), jnp.float32),
        grid=(B,),
        in_specs=[
            pl.BlockSpec((1, N, HIDDEN), per_batch),                 # y
            pl.BlockSpec((1, 1, N), per_batch),                      # mask
            pl.BlockSpec((HIDDEN, HIDDEN), full2), pl.BlockSpec((1, HIDDEN), full2),  # wk, bk
            pl.BlockSpec((HIDDEN, HIDDEN), full2), pl.BlockSpec((1, HIDDEN), full2),  # wq, bq
            pl.BlockSpec((HIDDEN, HIDDEN), full2), pl.BlockSpec((1, HIDDEN), full2),  # wm, bm
            pl.BlockSpec((HIDDEN, FF), full2), pl.BlockSpec((1, FF), full2),          # w1, b1
            pl.BlockSpec((FF, HIDDEN), full2), pl.BlockSpec((1, HIDDEN), full2),      # w2, b2
            pl.BlockSpec((1, HIDDEN), full2), pl.BlockSpec((1, HIDDEN), full2),       # ln1 a, b
            pl.BlockSpec((1, HIDDEN), full2), pl.BlockSpec((1, HIDDEN), full2),       # ln2 a, b
        ],
        out_specs=pl.BlockSpec((1, N, HIDDEN), per_batch),
        scratch_shapes=[pltpu.VMEM((N, HIDDEN), jnp.float32)],       # per-head ctx assembly
        compiler_params=pltpu.CompilerParams(dimension_semantics=("parallel",)),
    )(y, mask_f,
      params['wk'], params['bk'], params['wq'], params['bq'],
      params['wm'], params['bm'], params['w1'], params['b1'],
      params['w2'], params['b2'],
      params['ln1_a'], params['ln1_b'], params['ln2_a'], params['ln2_b'])


# ----- pure-JAX reference (mirrors the PyTorch module) --------------------------
def _layer_norm_ref(x, a, b, eps=LN_EPS):
    mu = jnp.mean(x, axis=-1, keepdims=True)
    xc = x - mu
    std = jnp.sqrt(jnp.sum(xc * xc, axis=-1, keepdims=True) / (x.shape[-1] - 1))
    return a * xc / (std + eps) + b


def reference(params, y, y_mask):
    kp = y @ params['wk'] + params['bk']
    qp = y @ params['wq'] + params['bq']

    def heads(x):
        return x.reshape(B, N, MULTI_HEAD, D).transpose(0, 2, 1, 3)

    kh, qh = heads(kp), heads(qp)
    vh = kh                                              # module sets v = k
    scores = jnp.einsum('bhqd,bhkd->bhqk', qh, kh) / math.sqrt(D)
    scores = jnp.where(y_mask, -1e9, scores)
    att = jax.nn.softmax(scores, axis=-1)
    ctx = jnp.einsum('bhqk,bhkd->bhqd', att, vh)
    atted = ctx.transpose(0, 2, 1, 3).reshape(B, N, HIDDEN) @ params['wm'] + params['bm']

    x = _layer_norm_ref(y + atted, params['ln1_a'], params['ln1_b'])
    ff = jnp.maximum(x @ params['w1'] + params['b1'], 0.0) @ params['w2'] + params['b2']
    return _layer_norm_ref(x + ff, params['ln2_a'], params['ln2_b'])


# ----- deterministic parameter init ---------------------------------------------
def init_params(key):
    ks = jax.random.split(key, 16)

    def w(kk, shape, scale=0.1):
        return scale * jax.random.normal(kk, shape, jnp.float32)

    return {
        'wk': w(ks[0], (HIDDEN, HIDDEN)), 'bk': w(ks[1], (1, HIDDEN)),
        'wq': w(ks[2], (HIDDEN, HIDDEN)), 'bq': w(ks[3], (1, HIDDEN)),
        'wm': w(ks[4], (HIDDEN, HIDDEN)), 'bm': w(ks[5], (1, HIDDEN)),
        'w1': w(ks[6], (HIDDEN, FF)), 'b1': w(ks[7], (1, FF)),
        'w2': w(ks[8], (FF, HIDDEN)), 'b2': w(ks[9], (1, HIDDEN)),
        'ln1_a': 1.0 + w(ks[10], (1, HIDDEN)), 'ln1_b': w(ks[11], (1, HIDDEN)),
        'ln2_a': 1.0 + w(ks[12], (1, HIDDEN)), 'ln2_b': w(ks[13], (1, HIDDEN)),
    }


if __name__ == "__main__":
    key = jax.random.PRNGKey(0)
    kprm, ky = jax.random.split(key, 2)
    params = init_params(kprm)

    y = jax.random.normal(ky, (B, N, HIDDEN), jnp.float32)
    # bool mask (B, 1, 1, N): mask the last 2 key positions of batch 1
    y_mask = jnp.zeros((B, 1, 1, N), dtype=bool).at[1, 0, 0, -2:].set(True)

    fn = jax.jit(functools.partial(sa_pallas, params))
    out = jax.block_until_ready(fn(y, y_mask))

    ref = reference(params, y, y_mask)
    assert out.shape == (B, N, HIDDEN), out.shape
    err = float(jnp.max(jnp.abs(out - ref)))
    assert jnp.allclose(out, ref, atol=2e-2, rtol=2e-2), f"max abs err {err}"
    print("KERNEL_OK")
</pallas_src>

<mosaic_0001>
module attributes {stable_mosaic.version = 11 : i64} {
  func.func @sa_kernel(%arg0: i32, %arg1: memref<1x8x32xf32, #tpu.memory_space<vmem>>, %arg2: memref<1x1x8xf32, #tpu.memory_space<vmem>>, %arg3: memref<32x32xf32, #tpu.memory_space<vmem>>, %arg4: memref<1x32xf32, #tpu.memory_space<vmem>>, %arg5: memref<32x32xf32, #tpu.memory_space<vmem>>, %arg6: memref<1x32xf32, #tpu.memory_space<vmem>>, %arg7: memref<32x32xf32, #tpu.memory_space<vmem>>, %arg8: memref<1x32xf32, #tpu.memory_space<vmem>>, %arg9: memref<32x128xf32, #tpu.memory_space<vmem>>, %arg10: memref<1x128xf32, #tpu.memory_space<vmem>>, %arg11: memref<128x32xf32, #tpu.memory_space<vmem>>, %arg12: memref<1x32xf32, #tpu.memory_space<vmem>>, %arg13: memref<1x32xf32, #tpu.memory_space<vmem>>, %arg14: memref<1x32xf32, #tpu.memory_space<vmem>>, %arg15: memref<1x32xf32, #tpu.memory_space<vmem>>, %arg16: memref<1x32xf32, #tpu.memory_space<vmem>>, %arg17: memref<1x8x32xf32, #tpu.memory_space<vmem>>, %arg18: memref<8x32xf32, #tpu.memory_space<vmem>>) attributes {dimension_semantics = [#tpu.dimension_semantics<parallel>], iteration_bounds = array<i64: 2>, scalar_prefetch = 0 : i64, scratch_operands = 1 : i64, tpu.core_type = #tpu.core_type<tc>, window_params = [{transform_indices = @transform_0, window_bounds = array<i64: 1, 8, 32>}, {transform_indices = @transform_1, window_bounds = array<i64: 1, 1, 8>}, {pipeline_mode = #tpu.pipeline_mode<synchronous>, transform_indices = @transform_2, window_bounds = array<i64: 32, 32>}, {pipeline_mode = #tpu.pipeline_mode<synchronous>, transform_indices = @transform_3, window_bounds = array<i64: 1, 32>}, {pipeline_mode = #tpu.pipeline_mode<synchronous>, transform_indices = @transform_4, window_bounds = array<i64: 32, 32>}, {pipeline_mode = #tpu.pipeline_mode<synchronous>, transform_indices = @transform_5, window_bounds = array<i64: 1, 32>}, {pipeline_mode = #tpu.pipeline_mode<synchronous>, transform_indices = @transform_6, window_bounds = array<i64: 32, 32>}, {pipeline_mode = #tpu.pipeline_mode<synchronous>, transform_indices = @transform_7, window_bounds = array<i64: 1, 32>}, {pipeline_mode = #tpu.pipeline_mode<synchronous>, transform_indices = @transform_8, window_bounds = array<i64: 32, 128>}, {pipeline_mode = #tpu.pipeline_mode<synchronous>, transform_indices = @transform_9, window_bounds = array<i64: 1, 128>}, {pipeline_mode = #tpu.pipeline_mode<synchronous>, transform_indices = @transform_10, window_bounds = array<i64: 128, 32>}, {pipeline_mode = #tpu.pipeline_mode<synchronous>, transform_indices = @transform_11, window_bounds = array<i64: 1, 32>}, {pipeline_mode = #tpu.pipeline_mode<synchronous>, transform_indices = @transform_12, window_bounds = array<i64: 1, 32>}, {pipeline_mode = #tpu.pipeline_mode<synchronous>, transform_indices = @transform_13, window_bounds = array<i64: 1, 32>}, {pipeline_mode = #tpu.pipeline_mode<synchronous>, transform_indices = @transform_14, window_bounds = array<i64: 1, 32>}, {pipeline_mode = #tpu.pipeline_mode<synchronous>, transform_indices = @transform_15, window_bounds = array<i64: 1, 32>}, {transform_indices = @transform_16, window_bounds = array<i64: 1, 8, 32>}]} {
    %c0 = arith.constant 0 : index
    %c0_0 = arith.constant 0 : index
    %c0_1 = arith.constant 0 : index
    %0 = vector.load %arg1[%c0, %c0_0, %c0_1] : memref<1x8x32xf32, #tpu.memory_space<vmem>>, vector<1x8x32xf32>
    %1 = vector.shape_cast %0 : vector<1x8x32xf32> to vector<8x32xf32>
    %c0_2 = arith.constant 0 : index
    %c0_3 = arith.constant 0 : index
    %c0_4 = arith.constant 0 : index
    %2 = vector.load %arg2[%c0_2, %c0_3, %c0_4] : memref<1x1x8xf32, #tpu.memory_space<vmem>>, vector<1x1x8xf32>
    %3 = vector.shape_cast %2 : vector<1x1x8xf32> to vector<1x8xf32>
    %c0_5 = arith.constant 0 : index
    %c0_6 = arith.constant 0 : index
    %4 = vector.load %arg3[%c0_5, %c0_6] : memref<32x32xf32, #tpu.memory_space<vmem>>, vector<32x32xf32>
    %cst = arith.constant dense<0.000000e+00> : vector<8x32xf32>
    %5 = tpu.matmul %1, %4, %cst {dimension_numbers = #tpu.dot_dimension_numbers<[1], [0], [0], [1], [0, 0, 1, 1], [], []>} : vector<8x32xf32>, vector<32x32xf32>, vector<8x32xf32> -> vector<8x32xf32>
    %c0_7 = arith.constant 0 : index
    %c0_8 = arith.constant 0 : index
    %6 = vector.load %arg4[%c0_7, %c0_8] : memref<1x32xf32, #tpu.memory_space<vmem>>, vector<1x32xf32>
    %7 = vector.broadcast %6 : vector<1x32xf32> to vector<8x32xf32>
    %8 = arith.addf %5, %7 : vector<8x32xf32>
    %c0_9 = arith.constant 0 : index
    %c0_10 = arith.constant 0 : index
    %9 = vector.load %arg5[%c0_9, %c0_10] : memref<32x32xf32, #tpu.memory_space<vmem>>, vector<32x32xf32>
    %cst_11 = arith.constant dense<0.000000e+00> : vector<8x32xf32>
    %10 = tpu.matmul %1, %9, %cst_11 {dimension_numbers = #tpu.dot_dimension_numbers<[1], [0], [0], [1], [0, 0, 1, 1], [], []>} : vector<8x32xf32>, vector<32x32xf32>, vector<8x32xf32> -> vector<8x32xf32>
    %c0_12 = arith.constant 0 : index
    %c0_13 = arith.constant 0 : index
    %11 = vector.load %arg6[%c0_12, %c0_13] : memref<1x32xf32, #tpu.memory_space<vmem>>, vector<1x32xf32>
    %12 = vector.broadcast %11 : vector<1x32xf32> to vector<8x32xf32>
    %13 = arith.addf %10, %12 : vector<8x32xf32>
    %14 = vector.extract_strided_slice %13 {offsets = [0, 0], sizes = [8, 4], strides = [1, 1]} : vector<8x32xf32> to vector<8x4xf32>
    %15 = vector.extract_strided_slice %8 {offsets = [0, 0], sizes = [8, 4], strides = [1, 1]} : vector<8x32xf32> to vector<8x4xf32>
    %16 = tpu.transpose %15, [1, 0] : vector<8x4xf32> -> vector<4x8xf32>
    %cst_14 = arith.constant dense<0.000000e+00> : vector<8x8xf32>
    %17 = tpu.matmul %14, %16, %cst_14 {dimension_numbers = #tpu.dot_dimension_numbers<[1], [0], [0], [1], [0, 0, 1, 1], [], []>} : vector<8x4xf32>, vector<4x8xf32>, vector<8x8xf32> -> vector<8x8xf32>
    %cst_15 = arith.constant 5.000000e-01 : f32
    %18 = vector.broadcast %cst_15 : f32 to vector<8x8xf32>
    %19 = arith.mulf %17, %18 : vector<8x8xf32>
    %cst_16 = arith.constant 5.000000e-01 : f32
    %20 = vector.broadcast %cst_16 : f32 to vector<1x8xf32>
    %21 = arith.cmpf ogt, %3, %20 : vector<1x8xf32>
    %cst_17 = arith.constant -1.000000e+09 : f32
    %22 = vector.shape_cast %21 : vector<1x8xi1> to vector<1x8xi1>
    %23 = vector.broadcast %22 : vector<1x8xi1> to vector<8x8xi1>
    %24 = vector.broadcast %cst_17 : f32 to vector<8x8xf32>
    %25 = arith.select %23, %24, %19 : vector<8x8xi1>, vector<8x8xf32>
    %cst_18 = arith.constant dense<0xFF800000> : vector<8xf32>
    %26 = vector.multi_reduction <maximumf>, %25, %cst_18 [1] : vector<8x8xf32> to vector<8xf32>
    %27 = vector.shape_cast %26 : vector<8xf32> to vector<8x1xf32>
    %28 = vector.broadcast %27 : vector<8x1xf32> to vector<8x8xf32>
    %29 = arith.subf %25, %28 : vector<8x8xf32>
    %30 = math.exp %29 : vector<8x8xf32>
    %cst_19 = arith.constant dense<0.000000e+00> : vector<8xf32>
    %31 = vector.multi_reduction <add>, %30, %cst_19 [1] : vector<8x8xf32> to vector<8xf32>
    %32 = vector.shape_cast %31 : vector<8xf32> to vector<8x1xf32>
    %33 = vector.broadcast %32 : vector<8x1xf32> to vector<8x8xf32>
    %34 = arith.divf %30, %33 : vector<8x8xf32>
    %cst_20 = arith.constant dense<0.000000e+00> : vector<8x4xf32>
    %35 = tpu.matmul %34, %15, %cst_20 {dimension_numbers = #tpu.dot_dimension_numbers<[1], [0], [0], [1], [0, 0, 1, 1], [], []>} : vector<8x8xf32>, vector<8x4xf32>, vector<8x4xf32> -> vector<8x4xf32>
    %c0_21 = arith.constant 0 : index
    %c0_22 = arith.constant 0 : index
    %36 = vector.load %arg18[%c0_21, %c0_22] : memref<8x32xf32, #tpu.memory_space<vmem>>, vector<8x4xf32>
    tpu.vector_store %arg18[%c0_21, %c0_22], %35 {strides = array<i32>} : memref<8x32xf32, #tpu.memory_space<vmem>>, vector<8x4xf32>,
    %37 = vector.extract_strided_slice %13 {offsets = [0, 4], sizes = [8, 4], strides = [1, 1]} : vector<8x32xf32> to vector<8x4xf32>
    %38 = vector.extract_strided_slice %8 {offsets = [0, 4], sizes = [8, 4], strides = [1, 1]} : vector<8x32xf32> to vector<8x4xf32>
    %39 = tpu.transpose %38, [1, 0] : vector<8x4xf32> -> vector<4x8xf32>
    %cst_23 = arith.constant dense<0.000000e+00> : vector<8x8xf32>
    %40 = tpu.matmul %37, %39, %cst_23 {dimension_numbers = #tpu.dot_dimension_numbers<[1], [0], [0], [1], [0, 0, 1, 1], [], []>} : vector<8x4xf32>, vector<4x8xf32>, vector<8x8xf32> -> vector<8x8xf32>
    %cst_24 = arith.constant 5.000000e-01 : f32
    %41 = vector.broadcast %cst_24 : f32 to vector<8x8xf32>
    %42 = arith.mulf %40, %41 : vector<8x8xf32>
    %cst_25 = arith.constant 5.000000e-01 : f32
    %43 = vector.broadcast %cst_25 : f32 to vector<1x8xf32>
    %44 = arith.cmpf ogt, %3, %43 : vector<1x8xf32>
    %cst_26 = arith.constant -1.000000e+09 : f32
    %45 = vector.shape_cast %44 : vector<1x8xi1> to vector<1x8xi1>
    %46 = vector.broadcast %45 : vector<1x8xi1> to vector<8x8xi1>
    %47 = vector.broadcast %cst_26 : f32 to vector<8x8xf32>
    %48 = arith.select %46, %47, %42 : vector<8x8xi1>, vector<8x8xf32>
    %cst_27 = arith.constant dense<0xFF800000> : vector<8xf32>
    %49 = vector.multi_reduction <maximumf>, %48, %cst_27 [1] : vector<8x8xf32> to vector<8xf32>
    %50 = vector.shape_cast %49 : vector<8xf32> to vector<8x1xf32>
    %51 = vector.broadcast %50 : vector<8x1xf32> to vector<8x8xf32>
    %52 = arith.subf %48, %51 : vector<8x8xf32>
    %53 = math.exp %52 : vector<8x8xf32>
    %cst_28 = arith.constant dense<0.000000e+00> : vector<8xf32>
    %54 = vector.multi_reduction <add>, %53, %cst_28 [1] : vector<8x8xf32> to vector<8xf32>
    %55 = vector.shape_cast %54 : vector<8xf32> to vector<8x1xf32>
    %56 = vector.broadcast %55 : vector<8x1xf32> to vector<8x8xf32>
    %57 = arith.divf %53, %56 : vector<8x8xf32>
    %cst_29 = arith.constant dense<0.000000e+00> : vector<8x4xf32>
    %58 = tpu.matmul %57, %38, %cst_29 {dimension_numbers = #tpu.dot_dimension_numbers<[1], [0], [0], [1], [0, 0, 1, 1], [], []>} : vector<8x8xf32>, vector<8x4xf32>, vector<8x4xf32> -> vector<8x4xf32>
    %c0_30 = arith.constant 0 : index
    %c4 = arith.constant 4 : index
    %59 = vector.load %arg18[%c0_30, %c4] : memref<8x32xf32, #tpu.memory_space<vmem>>, vector<8x4xf32>
    tpu.vector_store %arg18[%c0_30, %c4], %58 {strides = array<i32>} : memref<8x32xf32, #tpu.memory_space<vmem>>, vector<8x4xf32>,
    %60 = vector.extract_strided_slice %13 {offsets = [0, 8], sizes = [8, 4], strides = [1, 1]} : vector<8x32xf32> to vector<8x4xf32>
    %61 = vector.extract_strided_slice %8 {offsets = [0, 8], sizes = [8, 4], strides = [1, 1]} : vector<8x32xf32> to vector<8x4xf32>
    %62 = tpu.transpose %61, [1, 0] : vector<8x4xf32> -> vector<4x8xf32>
    %cst_31 = arith.constant dense<0.000000e+00> : vector<8x8xf32>
    %63 = tpu.matmul %60, %62, %cst_31 {dimension_numbers = #tpu.dot_dimension_numbers<[1], [0], [0], [1], [0, 0, 1, 1], [], []>} : vector<8x4xf32>, vector<4x8xf32>, vector<8x8xf32> -> vector<8x8xf32>
    %cst_32 = arith.constant 5.000000e-01 : f32
    %64 = vector.broadcast %cst_32 : f32 to vector<8x8xf32>
    %65 = arith.mulf %63, %64 : vector<8x8xf32>
    %cst_33 = arith.constant 5.000000e-01 : f32
    %66 = vector.broadcast %cst_33 : f32 to vector<1x8xf32>
    %67 = arith.cmpf ogt, %3, %66 : vector<1x8xf32>
    %cst_34 = arith.constant -1.000000e+09 : f32
    %68 = vector.shape_cast %67 : vector<1x8xi1> to vector<1x8xi1>
    %69 = vector.broadcast %68 : vector<1x8xi1> to vector<8x8xi1>
    %70 = vector.broadcast %cst_34 : f32 to vector<8x8xf32>
    %71 = arith.select %69, %70, %65 : vector<8x8xi1>, vector<8x8xf32>
    %cst_35 = arith.constant dense<0xFF800000> : vector<8xf32>
    %72 = vector.multi_reduction <maximumf>, %71, %cst_35 [1] : vector<8x8xf32> to vector<8xf32>
    %73 = vector.shape_cast %72 : vector<8xf32> to vector<8x1xf32>
    %74 = vector.broadcast %73 : vector<8x1xf32> to vector<8x8xf32>
    %75 = arith.subf %71, %74 : vector<8x8xf32>
    %76 = math.exp %75 : vector<8x8xf32>
    %cst_36 = arith.constant dense<0.000000e+00> : vector<8xf32>
    %77 = vector.multi_reduction <add>, %76, %cst_36 [1] : vector<8x8xf32> to vector<8xf32>
    %78 = vector.shape_cast %77 : vector<8xf32> to vector<8x1xf32>
    %79 = vector.broadcast %78 : vector<8x1xf32> to vector<8x8xf32>
    %80 = arith.divf %76, %79 : vector<8x8xf32>
    %cst_37 = arith.constant dense<0.000000e+00> : vector<8x4xf32>
    %81 = tpu.matmul %80, %61, %cst_37 {dimension_numbers = #tpu.dot_dimension_numbers<[1], [0], [0], [1], [0, 0, 1, 1], [], []>} : vector<8x8xf32>, vector<8x4xf32>, vector<8x4xf32> -> vector<8x4xf32>
    %c0_38 = arith.constant 0 : index
    %c8 = arith.constant 8 : index
    %82 = vector.load %arg18[%c0_38, %c8] : memref<8x32xf32, #tpu.memory_space<vmem>>, vector<8x4xf32>
    tpu.vector_store %arg18[%c0_38, %c8], %81 {strides = array<i32>} : memref<8x32xf32, #tpu.memory_space<vmem>>, vector<8x4xf32>,
    %83 = vector.extract_strided_slice %13 {offsets = [0, 12], sizes = [8, 4], strides = [1, 1]} : vector<8x32xf32> to vector<8x4xf32>
    %84 = vector.extract_strided_slice %8 {offsets = [0, 12], sizes = [8, 4], strides = [1, 1]} : vector<8x32xf32> to vector<8x4xf32>
    %85 = tpu.transpose %84, [1, 0] : vector<8x4xf32> -> vector<4x8xf32>
    %cst_39 = arith.constant dense<0.000000e+00> : vector<8x8xf32>
    %86 = tpu.matmul %83, %85, %cst_39 {dimension_numbers = #tpu.dot_dimension_numbers<[1], [0], [0], [1], [0, 0, 1, 1], [], []>} : vector<8x4xf32>, vector<4x8xf32>, vector<8x8xf32> -> vector<8x8xf32>
    %cst_40 = arith.constant 5.000000e-01 : f32
    %87 = vector.broadcast %cst_40 : f32 to vector<8x8xf32>
    %88 = arith.mulf %86, %87 : vector<8x8xf32>
    %cst_41 = arith.constant 5.000000e-01 : f32
    %89 = vector.broadcast %cst_41 : f32 to vector<1x8xf32>
    %90 = arith.cmpf ogt, %3, %89 : vector<1x8xf32>
    %cst_42 = arith.constant -1.000000e+09 : f32
    %91 = vector.shape_cast %90 : vector<1x8xi1> to vector<1x8xi1>
    %92 = vector.broadcast %91 : vector<1x8xi1> to vector<8x8xi1>
    %93 = vector.broadcast %cst_42 : f32 to vector<8x8xf32>
    %94 = arith.select %92, %93, %88 : vector<8x8xi1>, vector<8x8xf32>
    %cst_43 = arith.constant dense<0xFF800000> : vector<8xf32>
    %95 = vector.multi_reduction <maximumf>, %94, %cst_43 [1] : vector<8x8xf32> to vector<8xf32>
    %96 = vector.shape_cast %95 : vector<8xf32> to vector<8x1xf32>
    %97 = vector.broadcast %96 : vector<8x1xf32> to vector<8x8xf32>
    %98 = arith.subf %94, %97 : vector<8x8xf32>
    %99 = math.exp %98 : vector<8x8xf32>
    %cst_44 = arith.constant dense<0.000000e+00> : vector<8xf32>
    %100 = vector.multi_reduction <add>, %99, %cst_44 [1] : vector<8x8xf32> to vector<8xf32>
    %101 = vector.shape_cast %100 : vector<8xf32> to vector<8x1xf32>
    %102 = vector.broadcast %101 : vector<8x1xf32> to vector<8x8xf32>
    %103 = arith.divf %99, %102 : vector<8x8xf32>
    %cst_45 = arith.constant dense<0.000000e+00> : vector<8x4xf32>
    %104 = tpu.matmul %103, %84, %cst_45 {dimension_numbers = #tpu.dot_dimension_numbers<[1], [0], [0], [1], [0, 0, 1, 1], [], []>} : vector<8x8xf32>, vector<8x4xf32>, vector<8x4xf32> -> vector<8x4xf32>
    %c0_46 = arith.constant 0 : index
    %c12 = arith.constant 12 : index
    %105 = vector.load %arg18[%c0_46, %c12] : memref<8x32xf32, #tpu.memory_space<vmem>>, vector<8x4xf32>
    tpu.vector_store %arg18[%c0_46, %c12], %104 {strides = array<i32>} : memref<8x32xf32, #tpu.memory_space<vmem>>, vector<8x4xf32>,
    %106 = vector.extract_strided_slice %13 {offsets = [0, 16], sizes = [8, 4], strides = [1, 1]} : vector<8x32xf32> to vector<8x4xf32>
    %107 = vector.extract_strided_slice %8 {offsets = [0, 16], sizes = [8, 4], strides = [1, 1]} : vector<8x32xf32> to vector<8x4xf32>
    %108 = tpu.transpose %107, [1, 0] : vector<8x4xf32> -> vector<4x8xf32>
    %cst_47 = arith.constant dense<0.000000e+00> : vector<8x8xf32>
    %109 = tpu.matmul %106, %108, %cst_47 {dimension_numbers = #tpu.dot_dimension_numbers<[1], [0], [0], [1], [0, 0, 1, 1], [], []>} : vector<8x4xf32>, vector<4x8xf32>, vector<8x8xf32> -> vector<8x8xf32>
    %cst_48 = arith.constant 5.000000e-01 : f32
    %110 = vector.broadcast %cst_48 : f32 to vector<8x8xf32>
    %111 = arith.mulf %109, %110 : vector<8x8xf32>
    %cst_49 = arith.constant 5.000000e-01 : f32
    %112 = vector.broadcast %cst_49 : f32 to vector<1x8xf32>
    %113 = arith.cmpf ogt, %3, %112 : vector<1x8xf32>
    %cst_50 = arith.constant -1.000000e+09 : f32
    %114 = vector.shape_cast %113 : vector<1x8xi1> to vector<1x8xi1>
    %115 = vector.broadcast %114 : vector<1x8xi1> to vector<8x8xi1>
    %116 = vector.broadcast %cst_50 : f32 to vector<8x8xf32>
    %117 = arith.select %115, %116, %111 : vector<8x8xi1>, vector<8x8xf32>
    %cst_51 = arith.constant dense<0xFF800000> : vector<8xf32>
    %118 = vector.multi_reduction <maximumf>, %117, %cst_51 [1] : vector<8x8xf32> to vector<8xf32>
    %119 = vector.shape_cast %118 : vector<8xf32> to vector<8x1xf32>
    %120 = vector.broadcast %119 : vector<8x1xf32> to vector<8x8xf32>
    %121 = arith.subf %117, %120 : vector<8x8xf32>
    %122 = math.exp %121 : vector<8x8xf32>
    %cst_52 = arith.constant dense<0.000000e+00> : vector<8xf32>
    %123 = vector.multi_reduction <add>, %122, %cst_52 [1] : vector<8x8xf32> to vector<8xf32>
    %124 = vector.shape_cast %123 : vector<8xf32> to vector<8x1xf32>
    %125 = vector.broadcast %124 : vector<8x1xf32> to vector<8x8xf32>
    %126 = arith.divf %122, %125 : vector<8x8xf32>
    %cst_53 = arith.constant dense<0.000000e+00> : vector<8x4xf32>
    %127 = tpu.matmul %126, %107, %cst_53 {dimension_numbers = #tpu.dot_dimension_numbers<[1], [0], [0], [1], [0, 0, 1, 1], [], []>} : vector<8x8xf32>, vector<8x4xf32>, vector<8x4xf32> -> vector<8x4xf32>
    %c0_54 = arith.constant 0 : index
    %c16 = arith.constant 16 : index
    %128 = vector.load %arg18[%c0_54, %c16] : memref<8x32xf32, #tpu.memory_space<vmem>>, vector<8x4xf32>
    tpu.vector_store %arg18[%c0_54, %c16], %127 {strides = array<i32>} : memref<8x32xf32, #tpu.memory_space<vmem>>, vector<8x4xf32>,
    %129 = vector.extract_strided_slice %13 {offsets = [0, 20], sizes = [8, 4], strides = [1, 1]} : vector<8x32xf32> to vector<8x4xf32>
    %130 = vector.extract_strided_slice %8 {offsets = [0, 20], sizes = [8, 4], strides = [1, 1]} : vector<8x32xf32> to vector<8x4xf32>
    %131 = tpu.transpose %130, [1, 0] : vector<8x4xf32> -> vector<4x8xf32>
    %cst_55 = arith.constant dense<0.000000e+00> : vector<8x8xf32>
    %132 = tpu.matmul %129, %131, %cst_55 {dimension_numbers = #tpu.dot_dimension_numbers<[1], [0], [0], [1], [0, 0, 1, 1], [], []>} : vector<8x4xf32>, vector<4x8xf32>, vector<8x8xf32> -> vector<8x8xf32>
    %cst_56 = arith.constant 5.000000e-01 : f32
    %133 = vector.broadcast %cst_56 : f32 to vector<8x8xf32>
    %134 = arith.mulf %132, %133 : vector<8x8xf32>
    %cst_57 = arith.constant 5.000000e-01 : f32
    %135 = vector.broadcast %cst_57 : f32 to vector<1x8xf32>
    %136 = arith.cmpf ogt, %3, %135 : vector<1x8xf32>
    %cst_58 = arith.constant -1.000000e+09 : f32
    %137 = vector.shape_cast %136 : vector<1x8xi1> to vector<1x8xi1>
    %138 = vector.broadcast %137 : vector<1x8xi1> to vector<8x8xi1>
    %139 = vector.broadcast %cst_58 : f32 to vector<8x8xf32>
    %140 = arith.select %138, %139, %134 : vector<8x8xi1>, vector<8x8xf32>
    %cst_59 = arith.constant dense<0xFF800000> : vector<8xf32>
    %141 = vector.multi_reduction <maximumf>, %140, %cst_59 [1] : vector<8x8xf32> to vector<8xf32>
    %142 = vector.shape_cast %141 : vector<8xf32> to vector<8x1xf32>
    %143 = vector.broadcast %142 : vector<8x1xf32> to vector<8x8xf32>
    %144 = arith.subf %140, %143 : vector<8x8xf32>
    %145 = math.exp %144 : vector<8x8xf32>
    %cst_60 = arith.constant dense<0.000000e+00> : vector<8xf32>
    %146 = vector.multi_reduction <add>, %145, %cst_60 [1] : vector<8x8xf32> to vector<8xf32>
    %147 = vector.shape_cast %146 : vector<8xf32> to vector<8x1xf32>
    %148 = vector.broadcast %147 : vector<8x1xf32> to vector<8x8xf32>
    %149 = arith.divf %145, %148 : vector<8x8xf32>
    %cst_61 = arith.constant dense<0.000000e+00> : vector<8x4xf32>
    %150 = tpu.matmul %149, %130, %cst_61 {dimension_numbers = #tpu.dot_dimension_numbers<[1], [0], [0], [1], [0, 0, 1, 1], [], []>} : vector<8x8xf32>, vector<8x4xf32>, vector<8x4xf32> -> vector<8x4xf32>
    %c0_62 = arith.constant 0 : index
    %c20 = arith.constant 20 : index
    %151 = vector.load %arg18[%c0_62, %c20] : memref<8x32xf32, #tpu.memory_space<vmem>>, vector<8x4xf32>
    tpu.vector_store %arg18[%c0_62, %c20], %150 {strides = array<i32>} : memref<8x32xf32, #tpu.memory_space<vmem>>, vector<8x4xf32>,
    %152 = vector.extract_strided_slice %13 {offsets = [0, 24], sizes = [8, 4], strides = [1, 1]} : vector<8x32xf32> to vector<8x4xf32>
    %153 = vector.extract_strided_slice %8 {offsets = [0, 24], sizes = [8, 4], strides = [1, 1]} : vector<8x32xf32> to vector<8x4xf32>
    %154 = tpu.transpose %153, [1, 0] : vector<8x4xf32> -> vector<4x8xf32>
    %cst_63 = arith.constant dense<0.000000e+00> : vector<8x8xf32>
    %155 = tpu.matmul %152, %154, %cst_63 {dimension_numbers = #tpu.dot_dimension_numbers<[1], [0], [0], [1], [0, 0, 1, 1], [], []>} : vector<8x4xf32>, vector<4x8xf32>, vector<8x8xf32> -> vector<8x8xf32>
    %cst_64 = arith.constant 5.000000e-01 : f32
    %156 = vector.broadcast %cst_64 : f32 to vector<8x8xf32>
    %157 = arith.mulf %155, %156 : vector<8x8xf32>
    %cst_65 = arith.constant 5.000000e-01 : f32
    %158 = vector.broadcast %cst_65 : f32 to vector<1x8xf32>
    %159 = arith.cmpf ogt, %3, %158 : vector<1x8xf32>
    %cst_66 = arith.constant -1.000000e+09 : f32
    %160 = vector.shape_cast %159 : vector<1x8xi1> to vector<1x8xi1>
    %161 = vector.broadcast %160 : vector<1x8xi1> to vector<8x8xi1>
    %162 = vector.broadcast %cst_66 : f32 to vector<8x8xf32>
    %163 = arith.select %161, %162, %157 : vector<8x8xi1>, vector<8x8xf32>
    %cst_67 = arith.constant dense<0xFF800000> : vector<8xf32>
    %164 = vector.multi_reduction <maximumf>, %163, %cst_67 [1] : vector<8x8xf32> to vector<8xf32>
    %165 = vector.shape_cast %164 : vector<8xf32> to vector<8x1xf32>
    %166 = vector.broadcast %165 : vector<8x1xf32> to vector<8x8xf32>
    %167 = arith.subf %163, %166 : vector<8x8xf32>
    %168 = math.exp %167 : vector<8x8xf32>
    %cst_68 = arith.constant dense<0.000000e+00> : vector<8xf32>
    %169 = vector.multi_reduction <add>, %168, %cst_68 [1] : vector<8x8xf32> to vector<8xf32>
    %170 = vector.shape_cast %169 : vector<8xf32> to vector<8x1xf32>
    %171 = vector.broadcast %170 : vector<8x1xf32> to vector<8x8xf32>
    %172 = arith.divf %168, %171 : vector<8x8xf32>
    %cst_69 = arith.constant dense<0.000000e+00> : vector<8x4xf32>
    %173 = tpu.matmul %172, %153, %cst_69 {dimension_numbers = #tpu.dot_dimension_numbers<[1], [0], [0], [1], [0, 0, 1, 1], [], []>} : vector<8x8xf32>, vector<8x4xf32>, vector<8x4xf32> -> vector<8x4xf32>
    %c0_70 = arith.constant 0 : index
    %c24 = arith.constant 24 : index
    %174 = vector.load %arg18[%c0_70, %c24] : memref<8x32xf32, #tpu.memory_space<vmem>>, vector<8x4xf32>
    tpu.vector_store %arg18[%c0_70, %c24], %173 {strides = array<i32>} : memref<8x32xf32, #tpu.memory_space<vmem>>, vector<8x4xf32>,
    %175 = vector.extract_strided_slice %13 {offsets = [0, 28], sizes = [8, 4], strides = [1, 1]} : vector<8x32xf32> to vector<8x4xf32>
    %176 = vector.extract_strided_slice %8 {offsets = [0, 28], sizes = [8, 4], strides = [1, 1]} : vector<8x32xf32> to vector<8x4xf32>
    %177 = tpu.transpose %176, [1, 0] : vector<8x4xf32> -> vector<4x8xf32>
    %cst_71 = arith.constant dense<0.000000e+00> : vector<8x8xf32>
    %178 = tpu.matmul %175, %177, %cst_71 {dimension_numbers = #tpu.dot_dimension_numbers<[1], [0], [0], [1], [0, 0, 1, 1], [], []>} : vector<8x4xf32>, vector<4x8xf32>, vector<8x8xf32> -> vector<8x8xf32>
    %cst_72 = arith.constant 5.000000e-01 : f32
    %179 = vector.broadcast %cst_72 : f32 to vector<8x8xf32>
    %180 = arith.mulf %178, %179 : vector<8x8xf32>
    %cst_73 = arith.constant 5.000000e-01 : f32
    %181 = vector.broadcast %cst_73 : f32 to vector<1x8xf32>
    %182 = arith.cmpf ogt, %3, %181 : vector<1x8xf32>
    %cst_74 = arith.constant -1.000000e+09 : f32
    %183 = vector.shape_cast %182 : vector<1x8xi1> to vector<1x8xi1>
    %184 = vector.broadcast %183 : vector<1x8xi1> to vector<8x8xi1>
    %185 = vector.broadcast %cst_74 : f32 to vector<8x8xf32>
    %186 = arith.select %184, %185, %180 : vector<8x8xi1>, vector<8x8xf32>
    %cst_75 = arith.constant dense<0xFF800000> : vector<8xf32>
    %187 = vector.multi_reduction <maximumf>, %186, %cst_75 [1] : vector<8x8xf32> to vector<8xf32>
    %188 = vector.shape_cast %187 : vector<8xf32> to vector<8x1xf32>
    %189 = vector.broadcast %188 : vector<8x1xf32> to vector<8x8xf32>
    %190 = arith.subf %186, %189 : vector<8x8xf32>
    %191 = math.exp %190 : vector<8x8xf32>
    %cst_76 = arith.constant dense<0.000000e+00> : vector<8xf32>
    %192 = vector.multi_reduction <add>, %191, %cst_76 [1] : vector<8x8xf32> to vector<8xf32>
    %193 = vector.shape_cast %192 : vector<8xf32> to vector<8x1xf32>
    %194 = vector.broadcast %193 : vector<8x1xf32> to vector<8x8xf32>
    %195 = arith.divf %191, %194 : vector<8x8xf32>
    %cst_77 = arith.constant dense<0.000000e+00> : vector<8x4xf32>
    %196 = tpu.matmul %195, %176, %cst_77 {dimension_numbers = #tpu.dot_dimension_numbers<[1], [0], [0], [1], [0, 0, 1, 1], [], []>} : vector<8x8xf32>, vector<8x4xf32>, vector<8x4xf32> -> vector<8x4xf32>
    %c0_78 = arith.constant 0 : index
    %c28 = arith.constant 28 : index
    %197 = vector.load %arg18[%c0_78, %c28] : memref<8x32xf32, #tpu.memory_space<vmem>>, vector<8x4xf32>
    tpu.vector_store %arg18[%c0_78, %c28], %196 {strides = array<i32>} : memref<8x32xf32, #tpu.memory_space<vmem>>, vector<8x4xf32>,
    %c0_79 = arith.constant 0 : index
    %c0_80 = arith.constant 0 : index
    %198 = vector.load %arg18[%c0_79, %c0_80] : memref<8x32xf32, #tpu.memory_space<vmem>>, vector<8x32xf32>
    %c0_81 = arith.constant 0 : index
    %c0_82 = arith.constant 0 : index
    %199 = vector.load %arg7[%c0_81, %c0_82] : memref<32x32xf32, #tpu.memory_space<vmem>>, vector<32x32xf32>
    %cst_83 = arith.constant dense<0.000000e+00> : vector<8x32xf32>
    %200 = tpu.matmul %198, %199, %cst_83 {dimension_numbers = #tpu.dot_dimension_numbers<[1], [0], [0], [1], [0, 0, 1, 1], [], []>} : vector<8x32xf32>, vector<32x32xf32>, vector<8x32xf32> -> vector<8x32xf32>
    %c0_84 = arith.constant 0 : index
    %c0_85 = arith.constant 0 : index
    %201 = vector.load %arg8[%c0_84, %c0_85] : memref<1x32xf32, #tpu.memory_space<vmem>>, vector<1x32xf32>
    %202 = vector.broadcast %201 : vector<1x32xf32> to vector<8x32xf32>
    %203 = arith.addf %200, %202 : vector<8x32xf32>
    %204 = arith.addf %1, %203 : vector<8x32xf32>
    %cst_86 = arith.constant dense<0.000000e+00> : vector<8xf32>
    %205 = vector.multi_reduction <add>, %204, %cst_86 [1] : vector<8x32xf32> to vector<8xf32>
    %206 = vector.shape_cast %205 : vector<8xf32> to vector<8x1xf32>
    %cst_87 = arith.constant 3.200000e+01 : f32
    %207 = vector.broadcast %cst_87 : f32 to vector<8x1xf32>
    %208 = arith.divf %206, %207 : vector<8x1xf32>
    %209 = vector.broadcast %208 : vector<8x1xf32> to vector<8x32xf32>
    %210 = arith.subf %204, %209 : vector<8x32xf32>
    %211 = arith.mulf %210, %210 : vector<8x32xf32>
    %cst_88 = arith.constant dense<0.000000e+00> : vector<8xf32>
    %212 = vector.multi_reduction <add>, %211, %cst_88 [1] : vector<8x32xf32> to vector<8xf32>
    %213 = vector.shape_cast %212 : vector<8xf32> to vector<8x1xf32>
    %cst_89 = arith.constant 3.100000e+01 : f32
    %214 = vector.broadcast %cst_89 : f32 to vector<8x1xf32>
    %215 = arith.divf %213, %214 : vector<8x1xf32>
    %216 = math.sqrt %215 : vector<8x1xf32>
    %c0_90 = arith.constant 0 : index
    %c0_91 = arith.constant 0 : index
    %217 = vector.load %arg13[%c0_90, %c0_91] : memref<1x32xf32, #tpu.memory_space<vmem>>, vector<1x32xf32>
    %218 = vector.broadcast %217 : vector<1x32xf32> to vector<8x32xf32>
    %219 = arith.mulf %218, %210 : vector<8x32xf32>
    %cst_92 = arith.constant 9.99999997E-7 : f32
    %220 = vector.broadcast %cst_92 : f32 to vector<8x1xf32>
    %221 = arith.addf %216, %220 : vector<8x1xf32>
    %222 = vector.broadcast %221 : vector<8x1xf32> to vector<8x32xf32>
    %223 = arith.divf %219, %222 : vector<8x32xf32>
    %c0_93 = arith.constant 0 : index
    %c0_94 = arith.constant 0 : index
    %224 = vector.load %arg14[%c0_93, %c0_94] : memref<1x32xf32, #tpu.memory_space<vmem>>, vector<1x32xf32>
    %225 = vector.broadcast %224 : vector<1x32xf32> to vector<8x32xf32>
    %226 = arith.addf %223, %225 : vector<8x32xf32>
    %c0_95 = arith.constant 0 : index
    %c0_96 = arith.constant 0 : index
    %227 = vector.load %arg9[%c0_95, %c0_96] : memref<32x128xf32, #tpu.memory_space<vmem>>, vector<32x128xf32>
    %cst_97 = arith.constant dense<0.000000e+00> : vector<8x128xf32>
    %228 = tpu.matmul %226, %227, %cst_97 {dimension_numbers = #tpu.dot_dimension_numbers<[1], [0], [0], [1], [0, 0, 1, 1], [], []>} : vector<8x32xf32>, vector<32x128xf32>, vector<8x128xf32> -> vector<8x128xf32>
    %c0_98 = arith.constant 0 : index
    %c0_99 = arith.constant 0 : index
    %229 = vector.load %arg10[%c0_98, %c0_99] : memref<1x128xf32, #tpu.memory_space<vmem>>, vector<1x128xf32>
    %230 = vector.broadcast %229 : vector<1x128xf32> to vector<8x128xf32>
    %231 = arith.addf %228, %230 : vector<8x128xf32>
    %cst_100 = arith.constant 0.000000e+00 : f32
    %232 = vector.broadcast %cst_100 : f32 to vector<8x128xf32>
    %233 = arith.maximumf %231, %232 : vector<8x128xf32>
    %c0_101 = arith.constant 0 : index
    %c0_102 = arith.constant 0 : index
    %234 = vector.load %arg11[%c0_101, %c0_102] : memref<128x32xf32, #tpu.memory_space<vmem>>, vector<128x32xf32>
    %cst_103 = arith.constant dense<0.000000e+00> : vector<8x32xf32>
    %235 = tpu.matmul %233, %234, %cst_103 {dimension_numbers = #tpu.dot_dimension_numbers<[1], [0], [0], [1], [0, 0, 1, 1], [], []>} : vector<8x128xf32>, vector<128x32xf32>, vector<8x32xf32> -> vector<8x32xf32>
    %c0_104 = arith.constant 0 : index
    %c0_105 = arith.constant 0 : index
    %236 = vector.load %arg12[%c0_104, %c0_105] : memref<1x32xf32, #tpu.memory_space<vmem>>, vector<1x32xf32>
    %237 = vector.broadcast %236 : vector<1x32xf32> to vector<8x32xf32>
    %238 = arith.addf %235, %237 : vector<8x32xf32>
    %239 = arith.addf %226, %238 : vector<8x32xf32>
    %cst_106 = arith.constant dense<0.000000e+00> : vector<8xf32>
    %240 = vector.multi_reduction <add>, %239, %cst_106 [1] : vector<8x32xf32> to vector<8xf32>
    %241 = vector.shape_cast %240 : vector<8xf32> to vector<8x1xf32>
    %cst_107 = arith.constant 3.200000e+01 : f32
    %242 = vector.broadcast %cst_107 : f32 to vector<8x1xf32>
    %243 = arith.divf %241, %242 : vector<8x1xf32>
    %244 = vector.broadcast %243 : vector<8x1xf32> to vector<8x32xf32>
    %245 = arith.subf %239, %244 : vector<8x32xf32>
    %246 = arith.mulf %245, %245 : vector<8x32xf32>
    %cst_108 = arith.constant dense<0.000000e+00> : vector<8xf32>
    %247 = vector.multi_reduction <add>, %246, %cst_108 [1] : vector<8x32xf32> to vector<8xf32>
    %248 = vector.shape_cast %247 : vector<8xf32> to vector<8x1xf32>
    %cst_109 = arith.constant 3.100000e+01 : f32
    %249 = vector.broadcast %cst_109 : f32 to vector<8x1xf32>
    %250 = arith.divf %248, %249 : vector<8x1xf32>
    %251 = math.sqrt %250 : vector<8x1xf32>
    %c0_110 = arith.constant 0 : index
    %c0_111 = arith.constant 0 : index
    %252 = vector.load %arg15[%c0_110, %c0_111] : memref<1x32xf32, #tpu.memory_space<vmem>>, vector<1x32xf32>
    %253 = vector.broadcast %252 : vector<1x32xf32> to vector<8x32xf32>
    %254 = arith.mulf %253, %245 : vector<8x32xf32>
    %cst_112 = arith.constant 9.99999997E-7 : f32
    %255 = vector.broadcast %cst_112 : f32 to vector<8x1xf32>
    %256 = arith.addf %251, %255 : vector<8x1xf32>
    %257 = vector.broadcast %256 : vector<8x1xf32> to vector<8x32xf32>
    %258 = arith.divf %254, %257 : vector<8x32xf32>
    %c0_113 = arith.constant 0 : index
    %c0_114 = arith.constant 0 : index
    %259 = vector.load %arg16[%c0_113, %c0_114] : memref<1x32xf32, #tpu.memory_space<vmem>>, vector<1x32xf32>
    %260 = vector.broadcast %259 : vector<1x32xf32> to vector<8x32xf32>
    %261 = arith.addf %258, %260 : vector<8x32xf32>
    %c0_115 = arith.constant 0 : index
    %c0_116 = arith.constant 0 : index
    %c0_117 = arith.constant 0 : index
    %262 = vector.load %arg17[%c0_115, %c0_116, %c0_117] : memref<1x8x32xf32, #tpu.memory_space<vmem>>, vector<1x8x32xf32>
    %263 = vector.shape_cast %262 : vector<1x8x32xf32> to vector<8x32xf32>
    %264 = vector.shape_cast %261 : vector<8x32xf32> to vector<1x8x32xf32>
    tpu.vector_store %arg17[%c0_115, %c0_116, %c0_117], %264 {strides = array<i32>} : memref<1x8x32xf32, #tpu.memory_space<vmem>>, vector<1x8x32xf32>,
    return
  }
  func.func @transform_0(%arg0: i32) -> (i32, i32, i32) {
    %c0_i32 = arith.constant 0 : i32
    %c0_i32_0 = arith.constant 0 : i32
    %c0_i32_1 = arith.constant 0 : i32
    return %arg0, %c0_i32, %c0_i32_0 : i32, i32, i32
  }
  func.func @transform_1(%arg0: i32) -> (i32, i32, i32) {
    %c0_i32 = arith.constant 0 : i32
    %c0_i32_0 = arith.constant 0 : i32
    %c0_i32_1 = arith.constant 0 : i32
    return %arg0, %c0_i32, %c0_i32_0 : i32, i32, i32
  }
  func.func @transform_2(%arg0: i32) -> (i32, i32) {
    %c0_i32 = arith.constant 0 : i32
    %c0_i32_0 = arith.constant 0 : i32
    %c0_i32_1 = arith.constant 0 : i32
    return %c0_i32, %c0_i32_0 : i32, i32
  }
  func.func @transform_3(%arg0: i32) -> (i32, i32) {
    %c0_i32 = arith.constant 0 : i32
    %c0_i32_0 = arith.constant 0 : i32
    %c0_i32_1 = arith.constant 0 : i32
    return %c0_i32, %c0_i32_0 : i32, i32
  }
  func.func @transform_4(%arg0: i32) -> (i32, i32) {
    %c0_i32 = arith.constant 0 : i32
    %c0_i32_0 = arith.constant 0 : i32
    %c0_i32_1 = arith.constant 0 : i32
    return %c0_i32, %c0_i32_0 : i32, i32
  }
  func.func @transform_5(%arg0: i32) -> (i32, i32) {
    %c0_i32 = arith.constant 0 : i32
    %c0_i32_0 = arith.constant 0 : i32
    %c0_i32_1 = arith.constant 0 : i32
    return %c0_i32, %c0_i32_0 : i32, i32
  }
  func.func @transform_6(%arg0: i32) -> (i32, i32) {
    %c0_i32 = arith.constant 0 : i32
    %c0_i32_0 = arith.constant 0 : i32
    %c0_i32_1 = arith.constant 0 : i32
    return %c0_i32, %c0_i32_0 : i32, i32
  }
  func.func @transform_7(%arg0: i32) -> (i32, i32) {
    %c0_i32 = arith.constant 0 : i32
    %c0_i32_0 = arith.constant 0 : i32
    %c0_i32_1 = arith.constant 0 : i32
    return %c0_i32, %c0_i32_0 : i32, i32
  }
  func.func @transform_8(%arg0: i32) -> (i32, i32) {
    %c0_i32 = arith.constant 0 : i32
    %c0_i32_0 = arith.constant 0 : i32
    %c0_i32_1 = arith.constant 0 : i32
    return %c0_i32, %c0_i32_0 : i32, i32
  }
  func.func @transform_9(%arg0: i32) -> (i32, i32) {
    %c0_i32 = arith.constant 0 : i32
    %c0_i32_0 = arith.constant 0 : i32
    %c0_i32_1 = arith.constant 0 : i32
    return %c0_i32, %c0_i32_0 : i32, i32
  }
  func.func @transform_10(%arg0: i32) -> (i32, i32) {
    %c0_i32 = arith.constant 0 : i32
    %c0_i32_0 = arith.constant 0 : i32
    %c0_i32_1 = arith.constant 0 : i32
    return %c0_i32, %c0_i32_0 : i32, i32
  }
  func.func @transform_11(%arg0: i32) -> (i32, i32) {
    %c0_i32 = arith.constant 0 : i32
    %c0_i32_0 = arith.constant 0 : i32
    %c0_i32_1 = arith.constant 0 : i32
    return %c0_i32, %c0_i32_0 : i32, i32
  }
  func.func @transform_12(%arg0: i32) -> (i32, i32) {
    %c0_i32 = arith.constant 0 : i32
    %c0_i32_0 = arith.constant 0 : i32
    %c0_i32_1 = arith.constant 0 : i32
    return %c0_i32, %c0_i32_0 : i32, i32
  }
  func.func @transform_13(%arg0: i32) -> (i32, i32) {
    %c0_i32 = arith.constant 0 : i32
    %c0_i32_0 = arith.constant 0 : i32
    %c0_i32_1 = arith.constant 0 : i32
    return %c0_i32, %c0_i32_0 : i32, i32
  }
  func.func @transform_14(%arg0: i32) -> (i32, i32) {
    %c0_i32 = arith.constant 0 : i32
    %c0_i32_0 = arith.constant 0 : i32
    %c0_i32_1 = arith.constant 0 : i32
    return %c0_i32, %c0_i32_0 : i32, i32
  }
  func.func @transform_15(%arg0: i32) -> (i32, i32) {
    %c0_i32 = arith.constant 0 : i32
    %c0_i32_0 = arith.constant 0 : i32
    %c0_i32_1 = arith.constant 0 : i32
    return %c0_i32, %c0_i32_0 : i32, i32
  }
  func.func @transform_16(%arg0: i32) -> (i32, i32, i32) {
    %c0_i32 = arith.constant 0 : i32
    %c0_i32_0 = arith.constant 0 : i32
    %c0_i32_1 = arith.constant 0 : i32
    return %arg0, %c0_i32, %c0_i32_0 : i32, i32, i32
  }
}

</mosaic_0001>

<bundles_post_ra>
// kernel: sa_pallas.1
= control target key start
LH: loop header
LB: loop body
LE: loop exit
PB: predicated region body
PF: predicated region fallthrough
CT: control target
= control target key end

     0   :  { %s4176_s0 = inlined_call_operand.hbm [shape: f32[2,8,32], index: 0, kind: input, shape index: {}]   ;;  %s4177_s1 = inlined_call_operand.vmem [shape: f32[2,1,8], index: 1, kind: input, shape index: {}]   ;;  %s4178_s2 = inlined_call_operand.hbm [shape: f32[32,32], index: 2, kind: input, shape index: {}]   ;;  %s4179_s3 = inlined_call_operand.hbm [shape: f32[1,32], index: 3, kind: input, shape index: {}]   ;;  %s4180_s4 = inlined_call_operand.hbm [shape: f32[32,32], index: 4, kind: input, shape index: {}]   ;;  %s4181_s5 = inlined_call_operand.hbm [shape: f32[1,32], index: 5, kind: input, shape index: {}]   ;;  %s4182_s6 = inlined_call_operand.hbm [shape: f32[32,32], index: 6, kind: input, shape index: {}]   ;;  %s4183_s7 = inlined_call_operand.hbm [shape: f32[1,32], index: 7, kind: input, shape index: {}]   ;;  %s4184_s8 = inlined_call_operand.vmem [shape: f32[32,128], index: 8, kind: input, shape index: {}]   ;;  %s4185_s9 = inlined_call_operand.vmem [shape: f32[1,128], index: 9, kind: input, shape index: {}]   ;;  %s4186_s10 = inlined_call_operand.hbm [shape: f32[128,32], index: 10, kind: input, shape index: {}]   ;;  %s4187_s11 = inlined_call_operand.vmem [shape: f32[1,32], index: 11, kind: input, shape index: {}]   ;;  %s4188_s12 = inlined_call_operand.vmem [shape: f32[1,32], index: 12, kind: input, shape index: {}]   ;;  %s4189_s13 = inlined_call_operand.vmem [shape: f32[1,32], index: 13, kind: input, shape index: {}]   ;;  %s4190_s14 = inlined_call_operand.vmem [shape: f32[1,32], index: 14, kind: input, shape index: {}]   ;;  %s4191_s15 = inlined_call_operand.vmem [shape: f32[1,32], index: 15, kind: input, shape index: {}]   ;;  %s4192_s16 = inlined_call_operand.hbm [shape: f32[2,8,32], index: 16, kind: output, shape index: {}]  }
   0x1   :  { %4198 = sst [smem:[#allocation24_spill]] %s4176_s0 }
   0x2   :  { %4199 = sst [smem:[#allocation25_spill]] %s4177_s1 }
   0x3   :  { %4200 = sst [smem:[#allocation26_spill]] %s4178_s2 }
   0x4   :  { %4201 = sst [smem:[#allocation27_spill]] %s4179_s3 }
   0x5   :  { %4202 = sst [smem:[#allocation28_spill]] %s4185_s9 }
   0x6   :  { %4203 = sst [smem:[#allocation29_spill]] %s4187_s11 }
   0x7   :  { %4204 = sst [smem:[#allocation30_spill]] %s4188_s12 }
   0x8   :  { %4205 = sst [smem:[#allocation31_spill]] %s4189_s13 }
   0x9   :  { %4206 = sst [smem:[#allocation32_spill]] %s4190_s14 }
   0xa   :  { %4207 = sst [smem:[#allocation33_spill]] %s4191_s15 }
   0xb   :  { %4208 = sst [smem:[#allocation34_spill]] %s4192_s16 }
   0xc   :  { %21 = vsyncpa [#allocation4], 0 }
   0xd   :  { %23 = vsyncpa [#allocation4 + $0x1], 0 }
   0xe   :  { %24 = vsyncpa [#allocation7], 0 }
   0xf   :  { %25 = vsyncpa [#allocation10], 0 }
  0x10   :  { %26 = vsyncpa [#allocation13], 0 }
  0x11   :  { %27 = vsyncpa [#allocation16], 0 }
  0x12   :  { %28 = vsyncpa [#allocation5], 0 }
  0x13   :  { %30 = vsyncpa [#allocation5 + $0x1], 0  ;;  %s3624_s21 = smov 0   ;;  %s3626_s22 = smov 0  }
  0x14   :  { %s3628_s23 = smov 0   ;;  %s3630_s24 = smov 0  }
  0x15 LB: > { %s3510_s25 = smov [#allocation6]   ;;  %s3645_s27 = sadd.s32 4294967295, %s3508_s24   ;;  %s3508_s24 = sphi %s3630_s24, %s4243_s24   ;;  %s3504_s23 = sphi %s3628_s23, %s4242_s23   ;;  %s3500_s22 = sphi %s3626_s22, %s4241_s22   ;;  %s3496_s21 = sphi %s3624_s21, %s4240_s21  }
  0x16   : > { %s425_s26 = sshll.u32 %s3510_s25, 4  ;;  %p2685_p0 = scmp.ge.s32.totalorder %s3508_s24, 1  ;;  %s3650_s26 = int_to_ptr.vmem [resolvable:$true] %s425_s26 }
  0x17   : > { %p4195_p1 = scmp.eq.s32.totalorder %s3645_s27, 0  ;;  %p413_p2 = scmp.lt.s32.totalorder %s3508_s24, 3 }
  0x18   : > { %s3511_s29 = smov [#allocation9]   ;;  %s3512_s17 = smov [#allocation12]  }
  0x19   : > { %p3652_p3 = pnand %p2685_p0, %p413_p2  ;;  %s449_s30 = sshll.u32 %s3511_s29, 4  ;;  %s3665_s30 = int_to_ptr.vmem [resolvable:$true] %s449_s30 }
  0x1a   : > { %s473_s18 = sshll.u32 %s3512_s17, 4  ;;  %s4211_s2 = sld [smem:[#allocation26_spill]]  ;;  %s3667_s18 = int_to_ptr.vmem [resolvable:$true] %s473_s18 }
  0x1b   : > { %s4209_s28 = scalar_select %p3652_p3, 1, 0 }
  0x1c   : > { %p3055_p5 = pneg %p3652_p3 }
  0x1e   : > { %p3661_p6 = pnand %p3055_p5, %p4195_p1 }
  0x20   : > { %s3200_s25 = scalar_lea.hbm %s4211_s2, 512  ;;  %p3677_p8 = pneg %p3661_p6 }
  0x21   : > { %p3201_p7 = scmp.ne.s32.totalorder %s4211_s2, %s3200_s25  ;;  %p3207_p11 = scmp.lt.u32.totalorder %s3200_s25, %s4211_s2 }
  0x23   : > { %p3203_p9 = pnand %p3677_p8, %p3201_p7 }
  0x25   : > { %p3204_p10 = pneg %p3203_p9 }
  0x27   : > { %p3209_p12 = pnand %p3207_p11, %p3204_p10 }
  0x29   : > { %3212 = shalt.err (!%p3209_p12)
}
  0x2a   : > { %s3213_s15 = scalar_lea.vmem %s3650_s26, 512  ;;  %p3221_p5 = scmp.lt.s32.totalorder %s3650_s26, %s3650_s26 }
  0x2b   : > { %p3214_p13 = scmp.ne.s32.totalorder %s3650_s26, %s3213_s15  ;;  %p3222_p4 = scmp.lt.s32.totalorder %s3213_s15, %s3213_s15 }
  0x2d   : > { %p3216_p0 = pnand %p3214_p13, %p3677_p8  ;;  %p3223_p7 = por %p3222_p4, %p3221_p5 }
  0x2f   : > { %p3217_p2 = pneg %p3216_p0 }
  0x31   : > { %p3224_p9 = pnand %p3223_p7, %p3217_p2 }
  0x33   : > { %3227 = shalt.err (!%p3224_p9)
}
  0x34   : > { %s3513_s16 = smov 128   ;;  %s3514_s14 = smov 8  }
  0x35   : > { %3058 = dma.hbm_to_vmem [thread:$0]  (!%p3661_p6), %s4211_s2, 512, %s3650_s26, [#allocation7], %s3513_s16, %s3513_s16, %s3514_s14  }
  0x36   : > { %s3228_s15 = scalar_lea.hbm %s4180_s4, 512 }
  0x37   : > { %p3229_p4 = scmp.ne.s32.totalorder %s4180_s4, %s3228_s15  ;;  %p3235_p12 = scmp.lt.u32.totalorder %s3228_s15, %s4180_s4 }
  0x39   : > { %p3231_p10 = pnand %p3229_p4, %p3677_p8 }
  0x3b   : > { %p3232_p11 = pneg %p3231_p10 }
  0x3d   : > { %p3237_p13 = pnand %p3235_p12, %p3232_p11 }
  0x3f   : > { %3240 = shalt.err (!%p3237_p13)
}
  0x40   : > { %s3241_s26 = scalar_lea.vmem %s3665_s30, 512  ;;  %p3249_p7 = scmp.lt.s32.totalorder %s3665_s30, %s3665_s30 }
  0x41   : > { %p3242_p0 = scmp.ne.s32.totalorder %s3665_s30, %s3241_s26  ;;  %p3250_p9 = scmp.lt.s32.totalorder %s3241_s26, %s3241_s26 }
  0x43   : > { %p3244_p2 = pnand %p3242_p0, %p3677_p8  ;;  %p3251_p4 = por %p3250_p9, %p3249_p7 }
  0x45   : > { %p3245_p5 = pneg %p3244_p2 }
  0x47   : > { %p3252_p10 = pnand %p3251_p4, %p3245_p5 }
  0x49   : > { %3255 = shalt.err (!%p3252_p10)
}
  0x4a   : > { %3064 = dma.hbm_to_vmem [thread:$0]  (!%p3661_p6), %s4180_s4, 512, %s3665_s30, [#allocation10], %s3513_s16, %s3513_s16, %s3514_s14  }
  0x4b   : > { %s3256_s19 = scalar_lea.hbm %s4182_s6, 512 }
  0x4c   : > { %p3257_p11 = scmp.ne.s32.totalorder %s4182_s6, %s3256_s19  ;;  %p3263_p0 = scmp.lt.u32.totalorder %s3256_s19, %s4182_s6 }
  0x4e   : > { %p3259_p12 = pnand %p3257_p11, %p3677_p8 }
  0x50   : > { %p3260_p13 = pneg %p3259_p12 }
  0x52   : > { %p3265_p2 = pnand %p3263_p0, %p3260_p13 }
  0x54   : > { %3268 = shalt.err (!%p3265_p2)
}
  0x55   : > { %s3269_s30 = scalar_lea.vmem %s3667_s18, 512  ;;  %p3277_p4 = scmp.lt.s32.totalorder %s3667_s18, %s3667_s18 }
  0x56   : > { %p3270_p5 = scmp.ne.s32.totalorder %s3667_s18, %s3269_s30  ;;  %p3278_p10 = scmp.lt.s32.totalorder %s3269_s30, %s3269_s30 }
  0x58   : > { %p3272_p7 = pnand %p3270_p5, %p3677_p8  ;;  %p3279_p11 = por %p3278_p10, %p3277_p4 }
  0x5a   : > { %p3273_p9 = pneg %p3272_p7 }
  0x5c   : > { %p3280_p12 = pnand %p3279_p11, %p3273_p9 }
  0x5e   : > { %3283 = shalt.err (!%p3280_p12)
}
  0x5f   : > { %3070 = dma.hbm_to_vmem [thread:$0]  (!%p3661_p6), %s4182_s6, 512, %s3667_s18, [#allocation13], %s3513_s16, %s3513_s16, %s3514_s14  }
  0x60   : > { %s3515_s11 = smov [#allocation8]   ;;  %s3516_s13 = smov [#allocation11]  }
  0x61   : > { %s439_s12 = sshll.u32 %s3515_s11, 4  ;;  %s463_s19 = sshll.u32 %s3516_s13, 4  ;;  %s440_s12 = int_to_ptr.vmem [resolvable:$true] %s439_s12  ;;  %s464_s19 = int_to_ptr.vmem [resolvable:$true] %s463_s19 }
  0x62   : > { %s4213_s3 = sld [smem:[#allocation27_spill]] }
  0x68   : > { %s3284_s17 = scalar_lea.hbm %s4213_s3, 16 }
  0x69   : > { %p3285_p13 = scmp.ne.s32.totalorder %s4213_s3, %s3284_s17  ;;  %p3291_p5 = scmp.lt.u32.totalorder %s3284_s17, %s4213_s3 }
  0x6b   : > { %p3287_p0 = pnand %p3285_p13, %p3677_p8 }
  0x6d   : > { %p3288_p2 = pneg %p3287_p0 }
  0x6f   : > { %p3293_p7 = pnand %p3291_p5, %p3288_p2 }
  0x71   : > { %3296 = shalt.err (!%p3293_p7)
}
  0x72   : > { %s3297_s18 = scalar_lea.vmem %s440_s12, 16  ;;  %s3304_s9 = scalar_lea.vmem %s440_s12, 32 }
  0x73   : > { %p3298_p9 = scmp.ne.s32.totalorder %s440_s12, %s3297_s18  ;;  %p3305_p11 = scmp.lt.s32.totalorder %s440_s12, %s440_s12 }
  0x74   : > { %p3306_p12 = scmp.lt.s32.totalorder %s3304_s9, %s3297_s18 }
  0x75   : > { %p3300_p4 = pnand %p3298_p9, %p3677_p8 }
  0x76   : > { %p3307_p1 = por %p3306_p12, %p3305_p11 }
  0x77   : > { %p3301_p10 = pneg %p3300_p4 }
  0x79   : > { %p3308_p3 = pnand %p3307_p1, %p3301_p10 }
  0x7b   : > { %3311 = shalt.err (!%p3308_p3)
}
  0x7c   : > { %3061 = dma.hbm_to_vmem [thread:$0]  (!%p3661_p6), %s4213_s3, 16, %s440_s12, [#allocation7]  }
  0x7d   : > { %s3312_s25 = scalar_lea.hbm %s4181_s5, 16 }
  0x7e   : > { %p3313_p13 = scmp.ne.s32.totalorder %s4181_s5, %s3312_s25  ;;  %p3319_p3 = scmp.lt.u32.totalorder %s3312_s25, %s4181_s5 }
  0x80   : > { %p3315_p0 = pnand %p3313_p13, %p3677_p8 }
  0x82   : > { %p3316_p1 = pneg %p3315_p0 }
  0x84   : > { %p3321_p2 = pnand %p3319_p3, %p3316_p1 }
  0x86   : > { %3324 = shalt.err (!%p3321_p2)
}
  0x87   : > { %s3325_s18 = scalar_lea.vmem %s464_s19, 16  ;;  %s3332_s12 = scalar_lea.vmem %s464_s19, 32 }
  0x88   : > { %p3326_p5 = scmp.ne.s32.totalorder %s464_s19, %s3325_s18  ;;  %p3333_p4 = scmp.lt.s32.totalorder %s464_s19, %s464_s19 }
  0x89   : > { %p3334_p10 = scmp.lt.s32.totalorder %s3332_s12, %s3325_s18 }
  0x8a   : > { %p3328_p7 = pnand %p3326_p5, %p3677_p8 }
  0x8b   : > { %p3335_p11 = por %p3334_p10, %p3333_p4 }
  0x8c   : > { %p3329_p9 = pneg %p3328_p7 }
  0x8e   : > { %p3336_p12 = pnand %p3335_p11, %p3329_p9 }
  0x90   : > { %3339 = shalt.err (!%p3336_p12)
}
  0x91   : > { %3067 = dma.hbm_to_vmem [thread:$0]  (!%p3661_p6), %s4181_s5, 16, %s464_s19, [#allocation10]  }
  0x92   : > { %s3517_s13 = smov [#allocation14]   ;;  %s3518_s20 = smov [#allocation15]  }
  0x93   : > { %s487_s2 = sshll.u32 %s3517_s13, 4  ;;  %s503_s25 = sshll.u32 %s3518_s20, 4  ;;  %s488_s2 = int_to_ptr.vmem [resolvable:$true] %s487_s2  ;;  %s504_s25 = int_to_ptr.vmem [resolvable:$true] %s503_s25 }
  0x94   : > { %s3340_s30 = scalar_lea.hbm %s4183_s7, 16 }
  0x95   : > { %p3341_p13 = scmp.ne.s32.totalorder %s4183_s7, %s3340_s30  ;;  %p3347_p3 = scmp.lt.u32.totalorder %s3340_s30, %s4183_s7 }
  0x97   : > { %p3343_p0 = pnand %p3341_p13, %p3677_p8 }
  0x99   : > { %p3344_p1 = pneg %p3343_p0 }
  0x9b   : > { %p3349_p2 = pnand %p3347_p3, %p3344_p1 }
  0x9d   : > { %3352 = shalt.err (!%p3349_p2)
}
  0x9e   : > { %s3353_s19 = scalar_lea.vmem %s488_s2, 16  ;;  %s3360_s11 = scalar_lea.vmem %s488_s2, 32 }
  0x9f   : > { %p3354_p5 = scmp.ne.s32.totalorder %s488_s2, %s3353_s19  ;;  %p3361_p4 = scmp.lt.s32.totalorder %s488_s2, %s488_s2 }
  0xa0   : > { %p3362_p10 = scmp.lt.s32.totalorder %s3360_s11, %s3353_s19 }
  0xa1   : > { %p3356_p7 = pnand %p3354_p5, %p3677_p8 }
  0xa2   : > { %p3363_p11 = por %p3362_p10, %p3361_p4 }
  0xa3   : > { %p3357_p9 = pneg %p3356_p7 }
  0xa5   : > { %p3364_p12 = pnand %p3363_p11, %p3357_p9 }
  0xa7   : > { %3367 = shalt.err (!%p3364_p12)
}
  0xa8   : > { %3073 = dma.hbm_to_vmem [thread:$0]  (!%p3661_p6), %s4183_s7, 16, %s488_s2, [#allocation13]  }
  0xa9   : > { %s3368_s30 = scalar_lea.hbm %s4186_s10, 2048 }
  0xaa   : > { %p3369_p13 = scmp.ne.s32.totalorder %s4186_s10, %s3368_s30  ;;  %p3375_p3 = scmp.lt.u32.totalorder %s3368_s30, %s4186_s10 }
  0xac   : > { %p3371_p0 = pnand %p3369_p13, %p3677_p8 }
  0xae   : > { %p3372_p1 = pneg %p3371_p0 }
  0xb0   : > { %p3377_p2 = pnand %p3375_p3, %p3372_p1 }
  0xb2   : > { %3380 = shalt.err (!%p3377_p2)
}
  0xb3   : > { %s3381_s19 = scalar_lea.vmem %s504_s25, 2048  ;;  %p3389_p4 = scmp.lt.s32.totalorder %s504_s25, %s504_s25 }
  0xb4   : > { %p3382_p5 = scmp.ne.s32.totalorder %s504_s25, %s3381_s19  ;;  %p3390_p10 = scmp.lt.s32.totalorder %s3381_s19, %s3381_s19 }
  0xb6   : > { %p3384_p7 = pnand %p3382_p5, %p3677_p8  ;;  %p3391_p11 = por %p3390_p10, %p3389_p4 }
  0xb8   : > { %p3385_p9 = pneg %p3384_p7 }
  0xba   : > { %p3392_p12 = pnand %p3391_p11, %p3385_p9 }
  0xbc   : > { %3395 = shalt.err (!%p3392_p12)
}
  0xbd   : > { %3076 = dma.hbm_to_vmem [thread:$0]  (!%p3661_p6), %s4186_s10, 2048, %s504_s25, [#allocation16], %s3513_s16, %s3513_s16, %s3514_s14  }
  0xbe   : > { %s2684_s0 = sadd.s32 4294967294, %s3508_s24   ;;  %s3830_s29 = sadd.s32 1, %s3508_s24  }
  0xbf   : > { %s43_s13 = sadd.s32 1, %s3504_s23  ;;  %s40_s20 = ssub.s32 %s3508_s24, %s3830_s29 }
  0xc0   : > { %p50_p8 = scmp.ne.s32.totalorder %s3504_s23, %s3500_s22  ;;  %p41_p13 = scmp.eq.s32.totalorder %s40_s20, 0 }
  0xc1   : > { %p51_p0 = scmp.eq.s32.totalorder %s3508_s24, 0  ;;  %p56_p1 = scmp.ne.s32.totalorder %s3500_s22, %s3496_s21 }
  0xc2   : > { %p400_p3 = scmp.eq.s32.totalorder %s3645_s27, 1  ;;  %p4214_p5 = scmp.eq.s32.totalorder %s3645_s27, 0 }
  0xc3   : > { %s3842_s17 = scalar_select %p41_p13, %s3504_s23, %s43_s13  }
  0xc4   : > { %p52_p2 = por %p51_p0, %p50_p8  ;;  %p3846_p7 = por %p4214_p5, %p56_p1 }
  0xc5   : > { %p3850_p6 = por %p400_p3, %p50_p8  ;;  %p406_p9 = scmp.eq.s32.totalorder %s2684_s0, 1 }
  0xc6   : > { %p3092_p4 = scmp.lt.s32.totalorder %s3508_s24, 2  ;;  %s532_s14 = sand.u32 1, %s3504_s23  }
  0xc7   : > { %s4216_s16 = scalar_select %p3850_p6, 1, 0 }
  0xc8   : > { %p3856_p10 = por %p406_p9, %p56_p1  ;;  %s2694_s30 = sshll.u32 %s532_s14, 3 }
  0xc9   : > { %s2695_s26 = sshll.u32 %s3508_s24, 7  ;;  %s4218_s9 = sld [smem:[#allocation24_spill]] }
  0xca   : > { %s4217_s25 = scalar_select %p3856_p10, 1, 0 }
  0xcb   : > { %s536_s2 = scalar_lea.vmem [#allocation3], %s2694_s30  ;;  %p3866_p11 = pnand %p3092_p4, %p52_p2 }
  0xcc   : > { %s543_s11 = sshll.u32 %s536_s2, 4  ;;  %s533_s13 = scalar_lea.sflag [#allocation4], %s532_s14  ;;  %s3870_s11 = int_to_ptr.vmem [resolvable:$true] %s543_s11 }
  0xcd   : > { %p3398_p8 = pneg %p3866_p11 }
  0xcf   : > { %s3864_s19 = scalar_lea.hbm %s4218_s9, %s2695_s26  ;;  %s3401_s18 = scalar_lea.hbm %s4218_s9, 256 }
  0xd0   : > { %s3396_s20 = scalar_lea.hbm %s3864_s19, 128  ;;  %p3402_p1 = scmp.lt.u32.totalorder %s3864_s19, %s4218_s9 }
  0xd1   : > { %p3397_p12 = scmp.ne.s32.totalorder %s3864_s19, %s3396_s20  ;;  %p3403_p3 = scmp.lt.u32.totalorder %s3401_s18, %s3396_s20 }
  0xd2   : > { %p3405_p5 = scmp.lt.u32.totalorder %s3396_s20, %s3864_s19 }
  0xd3   : > { %p3399_p13 = pnand %p3398_p8, %p3397_p12  ;;  %p3404_p2 = por %p3403_p3, %p3402_p1 }
  0xd5   : > { %p3400_p0 = pneg %p3399_p13  ;;  %p3406_p9 = por %p3405_p5, %p3404_p2 }
  0xd7   : > { %p3407_p4 = pnand %p3406_p9, %p3400_p0 }
  0xd9   : > { %3410 = shalt.err (!%p3407_p4)
}
  0xda   : > { %s3411_s14 = scalar_lea.vmem %s3870_s11, 128  ;;  %s3519_s26 = smov [#allocation3]  }
  0xdb   : > { %p3412_p12 = scmp.ne.s32.totalorder %s3870_s11, %s3411_s14  ;;  %s3416_s30 = sshll.u32 %s3519_s26, 4  ;;  %s3417_s30 = int_to_ptr.vmem [resolvable:$false] %s3416_s30 }
  0xdc   : > { %s3418_s12 = scalar_lea.vmem %s3417_s30, 256  ;;  %p3419_p6 = scmp.lt.s32.totalorder %s3870_s11, %s3417_s30 }
  0xdd   : > { %p3414_p13 = pnand %p3412_p12, %p3398_p8  ;;  %p3420_p1 = scmp.lt.s32.totalorder %s3418_s12, %s3411_s14 }
  0xdf   : > { %p3415_p10 = pneg %p3414_p13  ;;  %p3421_p3 = por %p3420_p1, %p3419_p6 }
  0xe1   : > { %p3422_p2 = pnand %p3421_p3, %p3415_p10 }
  0xe3   : > { %3425 = shalt.err (!%p3422_p2)
}
  0xe4   : > { %3080 = dma.hbm_to_vmem [thread:$0]  (!%p3866_p11), %s3864_s19, 128, %s3870_s11, %s533_s13  }
  0xe5   : > { %p4220_p0 = scmp.ne.s32.totalorder %s4209_s28, 0 }
  0xe6   : > { %s3900_s20 = sand.u32 (!%p4220_p0), 1, %s3500_s22  }
  0xe7   : > { %558 = sbr.rel (%p4220_p0) target bundleno = 2800 (0xaf0), region = 84  ;;  %s2697_s18 = sshll.u32 (!%p4220_p0), %s3900_s20, 3 }
  0xe8   : > { %s561_s2 = scalar_lea.sflag (!%p4220_p0), [#allocation4], %s3900_s20  ;;  %s564_s14 = scalar_lea.vmem (!%p4220_p0), [#allocation3], %s2697_s18 }
  0xee   : > { %3471 = dma.done.wait (%p3846_p7), %s561_s2, 128  }
  0xef   : > { %3473 = vsyncadd (%p3846_p7), %s561_s2, 4294967168  ;;  %p4221_p6 = scmp.eq.s32.totalorder %s3645_s27, 0 }
  0xf1   : > { %3475 = dma.done.wait (%p4221_p6), [#allocation7], 528   ;;  %p4222_p10 = pmov %p4221_p6 }
  0xf2   : > { %p4223_p11 = pmov %p4221_p6 }
  0xf3   : > { %3477 = vsyncadd (%p4222_p10), [#allocation7], 4294966768 }
  0xf4   : > { %3479 = dma.done.wait (%p4223_p11), [#allocation10], 528   ;;  %p4224_p8 = pmov %p4221_p6 }
  0xf5   : > { %p4225_p5 = pmov %p4221_p6 }
  0xf6   : > { %3481 = vsyncadd (%p4224_p8), [#allocation10], 4294966768 }
  0xf7   : > { %3483 = dma.done.wait (%p4225_p5), [#allocation13], 528   ;;  %p4226_p9 = pmov %p4225_p5 }
  0xf8   : > { %p4227_p7 = pmov %p4225_p5 }
  0xf9   : > { %3485 = vsyncadd (%p4226_p9), [#allocation13], 4294966768 }
  0xfa   : > { %3487 = dma.done.wait (%p4227_p7), [#allocation16], 2048   ;;  %p4228_p4 = pmov %p4225_p5 }
  0xfb   : > { %v3520_v0 = vmov 0.0|0.0   ;;  %vm3521_vm0 = vmmov 0   ;;  %v3522_v1 = vmov 0.0   ;;  %v649_v2 = vld [vmem:[#allocation6] sm:$0xff]  ;;  %v650_v3 = vld [vmem:[#allocation6 + $0x8] sm:$0xff]  ;;  %v651_v4 = vld [vmem:[#allocation6 + $0x10] sm:$0xff]  ;;  %v895_v37 = vlaneseq }
  0xfc   : > { %3489 = vsyncadd (%p4228_p4), [#allocation16], 4294965248  ;;  %2975 = vmatprep.subr.bf16.mxu1 %v3520_v0  ;;  %2824 = vmatprep.mubr.msk.f32.mxu1 %vm3521_vm0, %v3522_v1  ;;  %v2976_v5 = vpack.c.bf16 %v650_v3, %v649_v2  ;;  %v652_v6 = vld [vmem:[#allocation6 + $0x18] sm:$0xff]  ;;  %v734_v8 = vld [vmem:[#allocation9] sm:$0xff]  ;;  %vm660_vm1 = vcmask 261120   ;;  %vm815_vm2 = vcmask 31744  }
  0xfd   : > { %2838 = vmatprep.subr.mxu0 %v3522_v1  ;;  %2840 = vmatprep.mubr.msk.f32.mxu0 %vm3521_vm0, %v3522_v1  ;;  %v2979_v7 = vpack.c.bf16 %v652_v6, %v651_v4  ;;  %v735_v9 = vld [vmem:[#allocation9 + $0x8] sm:$0xff]  ;;  %v736_v12 = vld [vmem:[#allocation9 + $0x10] sm:$0xff]  ;;  %v737_v13 = vld [vmem:[#allocation9 + $0x18] sm:$0xff]  ;;  %s3523_s28 = smov 120   ;;  %s3524_s15 = smov 124   ;;  %v896_v39 = vshrl.u32 %v895_v37, 7 }
  0xfe   : > { %2977 = vmatpush3.bf16.msra.mxu1 %v2976_v5  ;;  %v3933_v10 = vld [vmem:[%s564_s14] sm:$0xff]  ;;  %v2982_v11 = vpack.c.bf16 %v735_v9, %v734_v8  ;;  %v2985_v14 = vpack.c.bf16 %v737_v13, %v736_v12  ;;  %v2706_v15 = vld [vmem:[#allocation8] ss:$0 sm:$0xff]  ;;  %v2708_v19 = vld [vmem:[#allocation11] ss:$0 sm:$0xff]  ;;  %s3525_s19 = smov 116  }
  0xff   : > { %2978 = vmatprep.subr.bf16.mxu1 %v3520_v0  ;;  %s3526_s11 = smov 112   ;;  %s3527_s0 = smov 108   ;;  %v897_v40 = vsub.s32 0, %v896_v39  ;;  %v3530_v41 = vmov 0   ;;  %vm901_vm5 = vcmask 64512   ;;  %vm1156_vm6 = vcmask 64544  }
 0x100   : > { %s3528_s13 = smov 104   ;;  %s3529_s26 = smov 100   ;;  %vm1327_vm7 = vcmask 97344   ;;  %vm1498_vm8 = vcmask 130144   ;;  %vm1669_vm9 = vcmask 162944   ;;  %vm1840_vm10 = vcmask 195744  }
 0x101   : > { %p644_p12 = scmp.lt.s32.totalorder %s3645_s27, 1  ;;  %s4229_s1 = sld [smem:[#allocation25_spill]]  ;;  %vm2011_vm11 = vcmask 228544   ;;  %vm2182_vm12 = vcmask 261344  }
 0x102   : > { %2980 = vmatpush3.bf16.msra.mxu1 %v2979_v7  ;;  %s4231_s2 = sld [smem:[#allocation31_spill]]  ;;  %p4237_p1 = scmp.ne.s32.totalorder %s4216_s16, 0 }
 0x103   : > { %2981 = vmatprep.subr.bf16.mxu1 %v3520_v0  ;;  %s645_s30 = scalar_select %p644_p12, %s3645_s27, 1 }
 0x105   : > { %2825 = vmatmul.mubr.msk.f32.vlgmr.msra.gmra.mrb[0].mxu1 %vm660_vm1, %v3933_v10 }
 0x106   : > { %2983 = vmatpush3.bf16.msra.mxu1 %v2982_v11  ;;  %2835 = vmatprep.mubr.msk.f32.mxu1 %vm3521_vm0, %v3522_v1 }
 0x107   : > { %2984 = vmatprep.subr.bf16.mxu1 %v3520_v0  ;;  %s646_s14 = scalar_lea.vmem %s4229_s1, %s645_s30  ;;  %s4234_s30 = sld [smem:[#allocation32_spill]] }
 0x108   : > { %v648_v38 = vld [vmem:[%s646_s14] sm:$0x1]  ;;  %s4235_s14 = sld [smem:[#allocation33_spill]]  ;;  %s4236_s1 = sld [smem:[#allocation34_spill]] }
 0x109   : > { %vm893_vm3 = vcmp.gt.f32.partialorder %v648_v38, 0.5 }
 0x10a   : > { %2986 = vmatpush3.bf16.msra.mxu1 %v2985_v14  ;;  %v894_v42 = vsel %vm893_vm3, 1, %v3530_v41 }
 0x10b   : > { %2843 = vmatprep.subr.mxu1 %v3522_v1  ;;  %v898_v43 = vrot.slane %v894_v42, %v897_v40 }
 0x10d   : > { %2836 = vmatmul.mubr.msk.f32.vlgmr.msra.gmra.mrb[2].mxu1 %vm660_vm1, %v3933_v10  ;;  %vm899_vm4 = vcmp.eq.s32.totalorder %v898_v43, 1 }
 0x10e   : > { %2845 = vmatprep.mubr.msk.f32.mxu1 %vm3521_vm0, %v3522_v1 }
 0x1d8   : > { %v730_v16 = vpop.f32.mrb[0].mxu1 }
 0x1d9   : > { %v731_v17 = vadd.f32 %v2706_v15, %v730_v16  ;;  %v2826_v18 = vpop.f32.mrb[1].mxu1 }
 0x1db   : > { %1160 = vrot.lane.b32.xlu1 %v731_v17, %s3523_s28  ;;  %989 = vrot.lane.b32.xlu0 %v731_v17, %s3524_s15 }
 0x1dc   : > { %2839 = vmatpush3.xpose.msk.msra.mxu0 %vm815_vm2, %v731_v17  ;;  %2844 = vmatpush3.msra.mxu1 %v731_v17 }
 0x1dd   : > { %2848 = vmatprep.subr.mxu0 %v3522_v1  ;;  %2853 = vmatprep.subr.mxu1 %v3522_v1 }
 0x1e0   : > { %v811_v20 = vpop.f32.mrb[2].mxu1 }
 0x1e1   : > { %v812_v21 = vadd.f32 %v2708_v19, %v811_v20  ;;  %v2837_v22 = vpop.f32.mrb[3].mxu1 }
 0x1e3   : > { %1158 = vrot.lane.b32.xlu1 %v812_v21, %s3523_s28  ;;  %987 = vrot.lane.b32.xlu0 %v812_v21, %s3524_s15  ;;  %s3531_s28 = smov 4   ;;  %s3532_s15 = smov 8  }
 0x1e4   : > { %2841 = vmatmul.mubr.msk.f32.vlgmr.msra.gmra.mrb[0].mxu0 %vm815_vm2, %v812_v21 }
 0x1e5   : > { %2850 = vmatprep.mubr.msk.f32.mxu0 %vm3521_vm0, %v3522_v1 }
 0x1e7   : > { %1329 = vrot.lane.b32.xlu1 %v812_v21, %s3525_s19  ;;  %1331 = vrot.lane.b32.xlu0 %v731_v17, %s3525_s19  ;;  %s3533_s19 = smov 12  }
 0x1eb   : > { %1500 = vrot.lane.b32.xlu1 %v812_v21, %s3526_s11  ;;  %1502 = vrot.lane.b32.xlu0 %v731_v17, %s3526_s11  ;;  %s3534_s11 = smov 16  }
 0x1ef   : > { %1671 = vrot.lane.b32.xlu1 %v812_v21, %s3527_s0  ;;  %1673 = vrot.lane.b32.xlu0 %v731_v17, %s3527_s0  ;;  %s3535_s0 = smov 20  }
 0x1f3   : > { %1842 = vrot.lane.b32.xlu1 %v812_v21, %s3528_s13  ;;  %1844 = vrot.lane.b32.xlu0 %v731_v17, %s3528_s13  ;;  %s3536_s13 = smov 24  }
 0x1f7   : > { %2013 = vrot.lane.b32.xlu1 %v812_v21, %s3529_s26  ;;  %2015 = vrot.lane.b32.xlu0 %v731_v17, %s3529_s26  ;;  %s3537_s26 = smov 28  }
 0x24d   : > { %v3952_v23 = vpop.permute.xlu0 %989  ;;  %v3957_v24 = vpop.permute.xlu1 %1160 }
 0x24e   : > { %2849 = vmatpush3.xpose.msk.msra.mxu0 %vm815_vm2, %v3952_v23 }
 0x24f   : > { %2858 = vmatprep.subr.mxu0 %v3522_v1 }
 0x255   : > { %v1159_v25 = vpop.permute.xlu1 %1158  ;;  %v988_v26 = vpop.permute.xlu0 %987 }
 0x256   : > { %2851 = vmatmul.mubr.msk.f32.vlgmr.msra.gmra.mrb[2].mxu0 %vm815_vm2, %v988_v26 }
 0x257   : > { %2859 = vmatpush3.xpose.msk.msra.mxu0 %vm815_vm2, %v3957_v24  ;;  %2860 = vmatprep.mubr.msk.f32.mxu0 %vm3521_vm0, %v3522_v1 }
 0x258   : > { %2868 = vmatprep.subr.mxu0 %v3522_v1 }
 0x259   : > { %v1330_v27 = vpop.permute.xlu1 %1329  ;;  %v3965_v28 = vpop.permute.xlu0 %1331 }
 0x25a   : > { %2861 = vmatmul.mubr.msk.f32.vlgmr.msra.gmra.mrb[4].mxu0 %vm815_vm2, %v1159_v25 }
 0x25b   : > { %2869 = vmatpush3.xpose.msk.msra.mxu0 %vm815_vm2, %v3965_v28  ;;  %2870 = vmatprep.mubr.msk.f32.mxu0 %vm3521_vm0, %v3522_v1 }
 0x25c   : > { %2878 = vmatprep.subr.mxu0 %v3522_v1 }
 0x25d   : > { %v1501_v29 = vpop.permute.xlu1 %1500  ;;  %v3973_v30 = vpop.permute.xlu0 %1502 }
 0x25e   : > { %2871 = vmatmul.mubr.msk.f32.vlgmr.msra.gmra.mrb[6].mxu0 %vm815_vm2, %v1330_v27 }
 0x25f   : > { %2879 = vmatpush3.xpose.msk.msra.mxu0 %vm815_vm2, %v3973_v30  ;;  %2880 = vmatprep.mubr.msk.f32.mxu0 %vm3521_vm0, %v3522_v1 }
 0x260   : > { %2888 = vmatprep.subr.mxu0 %v3522_v1 }
 0x261   : > { %v1672_v31 = vpop.permute.xlu1 %1671  ;;  %v3981_v32 = vpop.permute.xlu0 %1673 }
 0x262   : > { %2881 = vmatmul.mubr.msk.f32.vlgmr.msra.gmra.mrb[8].mxu0 %vm815_vm2, %v1501_v29 }
 0x263   : > { %2889 = vmatpush3.xpose.msk.msra.mxu0 %vm815_vm2, %v3981_v32  ;;  %2890 = vmatprep.mubr.msk.f32.mxu0 %vm3521_vm0, %v3522_v1 }
 0x264   : > { %2898 = vmatprep.subr.mxu0 %v3522_v1 }
 0x265   : > { %v3989_v33 = vpop.permute.xlu0 %1844  ;;  %v1843_v34 = vpop.permute.xlu1 %1842 }
 0x266   : > { %2891 = vmatmul.mubr.msk.f32.vlgmr.msra.gmra.mrb[10].mxu0 %vm815_vm2, %v1672_v31 }
 0x267   : > { %2899 = vmatpush3.xpose.msk.msra.mxu0 %vm815_vm2, %v3989_v33  ;;  %2900 = vmatprep.mubr.msk.f32.mxu0 %vm3521_vm0, %v3522_v1 }
 0x268   : > { %2908 = vmatprep.subr.mxu0 %v3522_v1 }
 0x269   : > { %v3997_v35 = vpop.permute.xlu0 %2015  ;;  %v2014_v36 = vpop.permute.xlu1 %2013 }
 0x26a   : > { %2901 = vmatmul.mubr.msk.f32.vlgmr.msra.gmra.mrb[12].mxu0 %vm815_vm2, %v1843_v34 }
 0x26b   : > { %2909 = vmatpush3.xpose.msk.msra.mxu0 %vm815_vm2, %v3997_v35  ;;  %2910 = vmatprep.mubr.msk.f32.mxu0 %vm3521_vm0, %v3522_v1 }
 0x26c   : > { %2999 = vmatprep.subr.bf16.mxu0 %v3520_v0 }
 0x26e   : > { %2911 = vmatmul.mubr.msk.f32.vlgmr.msra.gmra.mrb[14].mxu0 %vm815_vm2, %v2014_v36 }
 0x26f   : > { %2972 = vmatprep.mubr.msk.f32.mxu0 %vm3521_vm0, %v3522_v1 }
 0x2b7   : > { %v888_v44 = vpop.f32.mrb[0].mxu0 }
 0x2b8   : > { %v892_v45 = vmul.f32 0.5, %v888_v44  ;;  %v2842_v46 = vpop.f32.mrb[1].mxu0 }
 0x2ba   : > { %v900_v47 = vsel %vm899_vm4, -1e+09, %v892_v45 }
 0x2bb   : > { %v902_v48 = vsel %vm901_vm5, %v900_v47, -inf }
 0x2bc   : > { %903 = vmax.xlane.f32.xlu0 %v902_v48 }
 0x329   : > { %v1061_v49 = vpop.f32.mrb[2].mxu0 }
 0x32a   : > { %v1065_v50 = vmul.f32 0.5, %v1061_v49  ;;  %v2852_v51 = vpop.f32.mrb[3].mxu0 }
 0x32c   : > { %v1066_v52 = vsel %vm899_vm4, -1e+09, %v1065_v50 }
 0x32d   : > { %v1232_v53 = vpop.f32.mrb[4].mxu0  ;;  %v1067_v54 = vsel %vm901_vm5, %v1066_v52, -inf }
 0x32e   : > { %v1236_v55 = vmul.f32 0.5, %v1232_v53  ;;  %1068 = vmax.xlane.f32.xlu1 %v1067_v54  ;;  %v2862_v56 = vpop.f32.mrb[5].mxu0 }
 0x330   : > { %v1237_v57 = vsel %vm899_vm4, -1e+09, %v1236_v55 }
 0x331   : > { %v1403_v58 = vpop.f32.mrb[6].mxu0  ;;  %v1238_v59 = vsel %vm901_vm5, %v1237_v57, -inf }
 0x332   : > { %v1407_v60 = vmul.f32 0.5, %v1403_v58  ;;  %1239 = vmax.xlane.f32.xlu0 %v1238_v59  ;;  %v2872_v61 = vpop.f32.mrb[7].mxu0 }
 0x334   : > { %v1408_v62 = vsel %vm899_vm4, -1e+09, %v1407_v60 }
 0x335   : > { %v1574_v63 = vpop.f32.mrb[8].mxu0  ;;  %v1409_v2 = vsel %vm901_vm5, %v1408_v62, -inf }
 0x336   : > { %v1578_v3 = vmul.f32 0.5, %v1574_v63  ;;  %1410 = vmax.xlane.f32.xlu0 %v1409_v2  ;;  %v2882_v4 = vpop.f32.mrb[9].mxu0 }
 0x338   : > { %v1579_v5 = vsel %vm899_vm4, -1e+09, %v1578_v3 }
 0x339   : > { %v1745_v6 = vpop.f32.mrb[10].mxu0  ;;  %v1580_v7 = vsel %vm901_vm5, %v1579_v5, -inf }
 0x33a   : > { %v1749_v8 = vmul.f32 0.5, %v1745_v6  ;;  %1581 = vmax.xlane.f32.xlu1 %v1580_v7  ;;  %v2892_v9 = vpop.f32.mrb[11].mxu0 }
 0x33c   : > { %v1750_v11 = vsel %vm899_vm4, -1e+09, %v1749_v8 }
 0x33d   : > { %v1916_v12 = vpop.f32.mrb[12].mxu0  ;;  %v1751_v13 = vsel %vm901_vm5, %v1750_v11, -inf }
 0x33e   : > { %v1920_v14 = vmul.f32 0.5, %v1916_v12  ;;  %1752 = vmax.xlane.f32.xlu0 %v1751_v13  ;;  %v2902_v15 = vpop.f32.mrb[13].mxu0 }
 0x340   : > { %v1921_v16 = vsel %vm899_vm4, -1e+09, %v1920_v14 }
 0x341   : > { %v2087_v17 = vpop.f32.mrb[14].mxu0  ;;  %v1922_v18 = vsel %vm901_vm5, %v1921_v16, -inf }
 0x342   : > { %v2091_v19 = vmul.f32 0.5, %v2087_v17  ;;  %1923 = vmax.xlane.f32.xlu1 %v1922_v18  ;;  %v2912_v20 = vpop.f32.mrb[15].mxu0 }
 0x344   : > { %v2092_v21 = vsel %vm899_vm4, -1e+09, %v2091_v19 }
 0x345   : > { %v2093_v22 = vsel %vm901_vm5, %v2092_v21, -inf }
 0x346   : > { %2094 = vmax.xlane.f32.xlu0 %v2093_v22 }
 0x349   : > { %v904_v25 = vpop.xlane.xlu0 %903 }
 0x34a   : > { %v905_v26 = vsub.f32 %v900_v47, %v904_v25 }
 0x34c   : > { %v906_v27 = vmul.f32 1.442695, %v905_v26 }
 0x34e   : > { %3160 = vpow2.f32 %v906_v27 }
 0x358   : > { %v3161_v29 = vpop.eup %3160 }
 0x359   : > { %v908_v31 = vsel %vm901_vm5, %v3161_v29, 0.0 }
 0x35a   : > { %909 = vadd.xlane.f32.xlu1 %v908_v31 }
 0x3bb   : > { %v1069_v34 = vpop.xlane.xlu1 %1068 }
 0x3bc   : > { %v1070_v36 = vsub.f32 %v1066_v52, %v1069_v34 }
 0x3be   : > { %v1071_v37 = vmul.f32 1.442695, %v1070_v36 }
 0x3bf   : > { %v1240_v38 = vpop.xlane.xlu0 %1239 }
 0x3c0   : > { %3162 = vpow2.f32 %v1071_v37  ;;  %v1241_v39 = vsub.f32 %v1237_v57, %v1240_v38 }
 0x3c2   : > { %v1242_v40 = vmul.f32 1.442695, %v1241_v39 }
 0x3c3   : > { %v1411_v41 = vpop.xlane.xlu0 %1410 }
 0x3c4   : > { %3164 = vpow2.f32 %v1242_v40  ;;  %v1412_v42 = vsub.f32 %v1408_v62, %v1411_v41 }
 0x3c6   : > { %v1413_v43 = vmul.f32 1.442695, %v1412_v42  ;;  %v2185_v42 = vld [vmem:[#allocation12] sm:$0xff] }
 0x3c7   : > { %v1582_v44 = vpop.xlane.xlu1 %1581 }
 0x3c8   : > { %3166 = vpow2.f32 %v1413_v43  ;;  %v1583_v45 = vsub.f32 %v1579_v5, %v1582_v44  ;;  %v2186_v43 = vld [vmem:[#allocation12 + $0x8] sm:$0xff]  ;;  %v2187_v44 = vld [vmem:[#allocation12 + $0x10] sm:$0xff] }
 0x3ca   : > { %v3163_v46 = vpop.eup %3162  ;;  %v1584_v47 = vmul.f32 1.442695, %v1583_v45 }
 0x3cb   : > { %v1753_v48 = vpop.xlane.xlu0 %1752  ;;  %v1073_v49 = vsel %vm901_vm5, %v3163_v46, 0.0 }
 0x3cc   : > { %3168 = vpow2.f32 %v1584_v47  ;;  %v1754_v50 = vsub.f32 %v1750_v11, %v1753_v48  ;;  %1074 = vadd.xlane.f32.xlu0 %v1073_v49  ;;  %v2188_v47 = vld [vmem:[#allocation12 + $0x18] sm:$0xff] }
 0x3cd   : > { %v2991_v48 = vpack.c.bf16 %v2188_v47, %v2187_v44 }
 0x3ce   : > { %v3165_v51 = vpop.eup %3164  ;;  %v1755_v52 = vmul.f32 1.442695, %v1754_v50 }
 0x3cf   : > { %v1924_v53 = vpop.xlane.xlu1 %1923  ;;  %v1244_v54 = vsel %vm901_vm5, %v3165_v51, 0.0 }
 0x3d0   : > { %3170 = vpow2.f32 %v1755_v52  ;;  %v1925_v55 = vsub.f32 %v1921_v16, %v1924_v53  ;;  %1245 = vadd.xlane.f32.xlu1 %v1244_v54 }
 0x3d2   : > { %v3167_v56 = vpop.eup %3166  ;;  %v1926_v57 = vmul.f32 1.442695, %v1925_v55 }
 0x3d3   : > { %v2095_v58 = vpop.xlane.xlu0 %2094  ;;  %v1415_v59 = vsel %vm901_vm5, %v3167_v56, 0.0 }
 0x3d4   : > { %3172 = vpow2.f32 %v1926_v57  ;;  %v2096_v60 = vsub.f32 %v2092_v21, %v2095_v58  ;;  %1416 = vadd.xlane.f32.xlu0 %v1415_v59 }
 0x3d6   : > { %v3169_v61 = vpop.eup %3168  ;;  %v2097_v62 = vmul.f32 1.442695, %v2096_v60 }
 0x3d7   : > { %v1586_v63 = vsel %vm901_vm5, %v3169_v61, 0.0 }
 0x3d8   : > { %3174 = vpow2.f32 %v2097_v62  ;;  %1587 = vadd.xlane.f32.xlu1 %v1586_v63  ;;  %v2734_v63 = vld [vmem:[#allocation14] ss:$0 sm:$0xff] }
 0x3da   : > { %v3171_v2 = vpop.eup %3170 }
 0x3db   : > { %v1757_v3 = vsel %vm901_vm5, %v3171_v2, 0.0 }
 0x3dc   : > { %1758 = vadd.xlane.f32.xlu0 %v1757_v3 }
 0x3de   : > { %v3173_v4 = vpop.eup %3172 }
 0x3df   : > { %v1928_v5 = vsel %vm901_vm5, %v3173_v4, 0.0 }
 0x3e0   : > { %1929 = vadd.xlane.f32.xlu1 %v1928_v5 }
 0x3e2   : > { %v3175_v6 = vpop.eup %3174 }
 0x3e3   : > { %v2099_v7 = vsel %vm901_vm5, %v3175_v6, 0.0 }
 0x3e4   : > { %2100 = vadd.xlane.f32.xlu0 %v2099_v7 }
 0x3e7   : > { %v910_v8 = vpop.xlane.xlu1 %909 }
 0x3e8   : > { %3176 = vrcp.f32 %v910_v8 }
 0x3f2   : > { %v3177_v9 = vpop.eup %3176 }
 0x3f3   : > { %v912_v11 = vmul.f32 %v3177_v9, %v3161_v29 }
 0x3f5   : > { %2846 = vmatmul.mubr.msk.f32.vlgmr.msra.gmra.mrb[4].mxu1 %vm901_vm5, %v912_v11 }
 0x3f6   : > { %2854 = vmatpush3.msra.mxu1 %v3952_v23  ;;  %2855 = vmatprep.mubr.msk.f32.mxu1 %vm3521_vm0, %v3522_v1 }
 0x3f7   : > { %2863 = vmatprep.subr.mxu1 %v3522_v1 }
 0x459   : > { %v1075_v12 = vpop.xlane.xlu0 %1074 }
 0x45a   : > { %3178 = vrcp.f32 %v1075_v12 }
 0x45d   : > { %v1246_v13 = vpop.xlane.xlu1 %1245 }
 0x45e   : > { %3180 = vrcp.f32 %v1246_v13  ;;  %v2309_v13 = vld [vmem:[%s4184_s8 + $0x8] sm:$0xff] }
 0x461   : > { %v1417_v14 = vpop.xlane.xlu0 %1416 }
 0x462   : > { %3182 = vrcp.f32 %v1417_v14 }
 0x464   : > { %v3179_v15 = vpop.eup %3178 }
 0x465   : > { %v1077_v16 = vmul.f32 %v3179_v15, %v3163_v46  ;;  %v1588_v17 = vpop.xlane.xlu1 %1587  ;;  %v2988_v46 = vpack.c.bf16 %v2186_v43, %v2185_v42  ;;  %v2311_v15 = vld [vmem:[%s4184_s8 + $0x18] sm:$0xff] }
 0x466   : > { %3184 = vrcp.f32 %v1588_v17  ;;  %v2393_v17 = vld [vmem:[#allocation15] sm:$0xff] }
 0x467   : > { %2856 = vmatmul.mubr.msk.f32.vlgmr.msra.gmra.mrb[6].mxu1 %vm901_vm5, %v1077_v16 }
 0x468   : > { %v3181_v18 = vpop.eup %3180  ;;  %2864 = vmatpush3.msra.mxu1 %v3957_v24  ;;  %2865 = vmatprep.mubr.msk.f32.mxu1 %vm3521_vm0, %v3522_v1 }
 0x469   : > { %v1248_v23 = vmul.f32 %v3181_v18, %v3165_v51  ;;  %v1759_v19 = vpop.xlane.xlu0 %1758  ;;  %2873 = vmatprep.subr.mxu1 %v3522_v1  ;;  %v2394_v18 = vld [vmem:[#allocation15 + $0x8] sm:$0xff] }
 0x46a   : > { %3186 = vrcp.f32 %v1759_v19  ;;  %v3000_v19 = vpack.c.bf16 %v2394_v18, %v2393_v17  ;;  %v2742_v18 = vld [vmem:[%s4235_s14] ss:$0 sm:$0xff] }
 0x46b   : > { %2866 = vmatmul.mubr.msk.f32.vlgmr.msra.gmra.mrb[8].mxu1 %vm901_vm5, %v1248_v23  ;;  %v2395_v23 = vld [vmem:[#allocation15 + $0x10] sm:$0xff] }
 0x46c   : > { %v3183_v20 = vpop.eup %3182  ;;  %2874 = vmatpush3.msra.mxu1 %v3965_v28  ;;  %2875 = vmatprep.mubr.msk.f32.mxu1 %vm3521_vm0, %v3522_v1 }
 0x46d   : > { %v1419_v21 = vmul.f32 %v3183_v20, %v3167_v56  ;;  %v1930_v22 = vpop.xlane.xlu1 %1929  ;;  %2883 = vmatprep.subr.mxu1 %v3522_v1  ;;  %v2396_v20 = vld [vmem:[#allocation15 + $0x18] sm:$0xff]  ;;  %3001 = vmatpush3.bf16.msra.mxu0 %v3000_v19 }
 0x46e   : > { %3188 = vrcp.f32 %v1930_v22  ;;  %3002 = vmatprep.subr.bf16.mxu0 %v3520_v0  ;;  %v2397_v22 = vld [vmem:[#allocation15 + $0x20] sm:$0xff] }
 0x46f   : > { %2876 = vmatmul.mubr.msk.f32.vlgmr.msra.gmra.mrb[10].mxu1 %vm901_vm5, %v1419_v21  ;;  %v3003_v21 = vpack.c.bf16 %v2396_v20, %v2395_v23 }
 0x470   : > { %v3185_v24 = vpop.eup %3184  ;;  %2884 = vmatpush3.msra.mxu1 %v3973_v30  ;;  %2885 = vmatprep.mubr.msk.f32.mxu1 %vm3521_vm0, %v3522_v1 }
 0x471   : > { %v1590_v25 = vmul.f32 %v3185_v24, %v3169_v61  ;;  %v2101_v26 = vpop.xlane.xlu0 %2100  ;;  %2893 = vmatprep.subr.mxu1 %v3522_v1  ;;  %v2398_v24 = vld [vmem:[#allocation15 + $0x28] sm:$0xff]  ;;  %3004 = vmatpush3.bf16.msra.mxu0 %v3003_v21 }
 0x472   : > { %3190 = vrcp.f32 %v2101_v26  ;;  %3005 = vmatprep.subr.bf16.mxu0 %v3520_v0  ;;  %v2399_v26 = vld [vmem:[#allocation15 + $0x30] sm:$0xff] }
 0x473   : > { %2886 = vmatmul.mubr.msk.f32.vlgmr.msra.gmra.mrb[12].mxu1 %vm901_vm5, %v1590_v25  ;;  %v3006_v25 = vpack.c.bf16 %v2398_v24, %v2397_v22 }
 0x474   : > { %v3187_v28 = vpop.eup %3186  ;;  %2894 = vmatpush3.msra.mxu1 %v3981_v32  ;;  %2895 = vmatprep.mubr.msk.f32.mxu1 %vm3521_vm0, %v3522_v1 }
 0x475   : > { %v1761_v27 = vmul.f32 %v3187_v28, %v3171_v2  ;;  %2903 = vmatprep.subr.mxu1 %v3522_v1  ;;  %v2400_v28 = vld [vmem:[#allocation15 + $0x38] sm:$0xff]  ;;  %3007 = vmatpush3.bf16.msra.mxu0 %v3006_v25 }
 0x476   : > { %3008 = vmatprep.subr.bf16.mxu0 %v3520_v0 }
 0x477   : > { %2896 = vmatmul.mubr.msk.f32.vlgmr.msra.gmra.mrb[14].mxu1 %vm901_vm5, %v1761_v27  ;;  %v3009_v27 = vpack.c.bf16 %v2400_v28, %v2399_v26 }
 0x478   : > { %v3189_v30 = vpop.eup %3188  ;;  %2904 = vmatpush3.msra.mxu1 %v3989_v33  ;;  %2905 = vmatprep.mubr.msk.f32.mxu1 %vm3521_vm0, %v3522_v1 }
 0x479   : > { %v1932_v29 = vmul.f32 %v3189_v30, %v3173_v4  ;;  %2913 = vmatprep.subr.mxu1 %v3522_v1  ;;  %v2401_v30 = vld [vmem:[#allocation15 + $0x40] sm:$0xff]  ;;  %3010 = vmatpush3.bf16.msra.mxu0 %v3009_v27 }
 0x47a   : > { %3011 = vmatprep.subr.bf16.mxu0 %v3520_v0 }
 0x47b   : > { %2906 = vmatmul.mubr.msk.f32.vlgmr.msra.gmra.mrb[16].mxu1 %vm901_vm5, %v1932_v29  ;;  %v2402_v29 = vld [vmem:[#allocation15 + $0x48] sm:$0xff] }
 0x47c   : > { %v3191_v32 = vpop.eup %3190  ;;  %2914 = vmatpush3.msra.mxu1 %v3997_v35  ;;  %2915 = vmatprep.mubr.msk.f32.mxu1 %vm3521_vm0, %v3522_v1 }
 0x47d   : > { %v2103_v31 = vmul.f32 %v3191_v32, %v3175_v6  ;;  %2987 = vmatprep.subr.bf16.mxu1 %v3520_v0  ;;  %v3012_v32 = vpack.c.bf16 %v2402_v29, %v2401_v30 }
 0x47f   : > { %2916 = vmatmul.mubr.msk.f32.vlgmr.msra.gmra.mrb[18].mxu1 %vm901_vm5, %v2103_v31  ;;  %v2403_v31 = vld [vmem:[#allocation15 + $0x50] sm:$0xff]  ;;  %3013 = vmatpush3.bf16.msra.mxu0 %v3012_v32 }
 0x480   : > { %2926 = vmatprep.mubr.msk.f32.mxu1 %vm3521_vm0, %v3522_v1  ;;  %2989 = vmatpush3.bf16.msra.mxu1 %v2988_v46 }
 0x481   : > { %2990 = vmatprep.subr.bf16.mxu1 %v3520_v0  ;;  %3014 = vmatprep.subr.bf16.mxu0 %v3520_v0 }
 0x484   : > { %2992 = vmatpush3.bf16.msra.mxu1 %v2991_v48 }
 0x485   : > { %2993 = vmatprep.subr.bf16.mxu1 %v3520_v0 }
 0x4c8   : > { %v982_v33 = vpop.f32.mrb[4].mxu1 }
 0x4c9   : > { %986 = vst.msk [vmem:[#allocation2] sm:$0xff] %vm815_vm2, %v982_v33  ;;  %v2847_v34 = vpop.f32.mrb[5].mxu1  ;;  %v2404_v33 = vld [vmem:[#allocation15 + $0x58] sm:$0xff] }
 0x4ca   : > { %v3015_v34 = vpack.c.bf16 %v2404_v33, %v2403_v31 }
 0x4cc   : > { %3016 = vmatpush3.bf16.msra.mxu0 %v3015_v34 }
 0x4cd   : > { %3017 = vmatprep.subr.bf16.mxu0 %v3520_v0 }
 0x53a   : > { %v1148_v36 = vpop.f32.mrb[6].mxu1 }
 0x53b   : > { %1153 = vrot.lane.b32.xlu1 %v1148_v36, %s3531_s28  ;;  %v2857_v37 = vpop.f32.mrb[7].mxu1  ;;  %v2405_v36 = vld [vmem:[#allocation15 + $0x60] sm:$0xff]  ;;  %s2744_s28 = sshll.u32 %s3645_s27, 7  ;;  %s3538_s27 = smov [#allocation17]  }
 0x53c   : > { %v2406_v37 = vld [vmem:[#allocation15 + $0x68] sm:$0xff]  ;;  %s4131_s3 = scalar_lea.hbm %s4236_s1, %s2744_s28 }
 0x53e   : > { %v1319_v35 = vpop.f32.mrb[8].mxu1 }
 0x53f   : > { %1324 = vrot.lane.b32.xlu0 %v1319_v35, %s3532_s15  ;;  %v2867_v38 = vpop.f32.mrb[9].mxu1  ;;  %v3018_v35 = vpack.c.bf16 %v2406_v37, %v2405_v36  ;;  %s4232_s15 = sld [smem:[#allocation28_spill]] }
 0x541   : > { %3019 = vmatpush3.bf16.msra.mxu0 %v3018_v35 }
 0x542   : > { %v1490_v39 = vpop.f32.mrb[10].mxu1  ;;  %3020 = vmatprep.subr.bf16.mxu0 %v3520_v0 }
 0x543   : > { %1495 = vrot.lane.b32.xlu1 %v1490_v39, %s3533_s19  ;;  %v2877_v40 = vpop.f32.mrb[11].mxu1 }
 0x546   : > { %v1661_v41 = vpop.f32.mrb[12].mxu1 }
 0x547   : > { %1666 = vrot.lane.b32.xlu1 %v1661_v41, %s3534_s11  ;;  %v2887_v45 = vpop.f32.mrb[13].mxu1 }
 0x54a   : > { %v1832_v49 = vpop.f32.mrb[14].mxu1 }
 0x54b   : > { %1837 = vrot.lane.b32.xlu0 %v1832_v49, %s3535_s0  ;;  %v2897_v50 = vpop.f32.mrb[15].mxu1  ;;  %s4233_s0 = sld [smem:[#allocation29_spill]] }
 0x54e   : > { %v2003_v51 = vpop.f32.mrb[16].mxu1 }
 0x54f   : > { %2008 = vrot.lane.b32.xlu1 %v2003_v51, %s3536_s13  ;;  %v2907_v52 = vpop.f32.mrb[17].mxu1  ;;  %v2407_v51 = vld [vmem:[#allocation15 + $0x70] sm:$0xff]  ;;  %s2525_s13 = scalar_lea.sflag [#allocation5], %s3900_s20 }
 0x550   : > { %v2408_v52 = vld [vmem:[#allocation15 + $0x78] sm:$0xff] }
 0x552   : > { %v2174_v53 = vpop.f32.mrb[18].mxu1 }
 0x553   : > { %2179 = vrot.lane.b32.xlu0 %v2174_v53, %s3537_s26  ;;  %v2917_v54 = vpop.f32.mrb[19].mxu1  ;;  %s4230_s26 = sld [smem:[#allocation30_spill]]  ;;  %v3021_v53 = vpack.c.bf16 %v2408_v52, %v2407_v51 }
 0x554   : > { %v2738_v54 = vld [vmem:[%s4232_s15] ss:$0 sm:$0xff]  ;;  %s643_s15 = scalar_lea.vmem [#allocation17], %s2697_s18  ;;  %s3430_s18 = sshll.u32 %s3538_s27, 4  ;;  %s3431_s18 = int_to_ptr.vmem [resolvable:$false] %s3430_s18 }
 0x555   : > { %3022 = vmatpush3.bf16.msra.mxu0 %v3021_v53  ;;  %s2538_s19 = sshll.u32 %s643_s15, 4  ;;  %s4133_s19 = int_to_ptr.vmem [resolvable:$true] %s2538_s19 }
 0x556   : > { %p3433_p0 = scmp.lt.s32.totalorder %s4133_s19, %s3431_s18 }
 0x559   : > { %v2736_v46 = vld [vmem:[%s4230_s26] ss:$0 sm:$0xff]  ;;  %s3426_s26 = scalar_lea.vmem %s4133_s19, 128 }
 0x55a   : > { %p3427_p13 = scmp.ne.s32.totalorder %s4133_s19, %s3426_s26 }
 0x55c   : > { %p3428_p3 = pnand %p3427_p13, %p4237_p1 }
 0x55e   : > { %p3429_p2 = pneg %p3428_p3 }
 0x5ad   : > { %v1154_v55 = vpop.permute.xlu1 %1153 }
 0x5ae   : > { %1157 = vst.msk [vmem:[#allocation2] sm:$0xff] %vm1156_vm6, %v1154_v55 }
 0x5b1   : > { %v1325_v56 = vpop.permute.xlu0 %1324 }
 0x5b2   : > { %1328 = vst.msk [vmem:[#allocation2] sm:$0xff] %vm1327_vm7, %v1325_v56 }
 0x5b5   : > { %v1496_v57 = vpop.permute.xlu1 %1495 }
 0x5b6   : > { %1499 = vst.msk [vmem:[#allocation2] sm:$0xff] %vm1498_vm8, %v1496_v57 }
 0x5b9   : > { %v1667_v58 = vpop.permute.xlu1 %1666 }
 0x5ba   : > { %1670 = vst.msk [vmem:[#allocation2] sm:$0xff] %vm1669_vm9, %v1667_v58 }
 0x5bd   : > { %v1838_v59 = vpop.permute.xlu0 %1837 }
 0x5be   : > { %1841 = vst.msk [vmem:[#allocation2] sm:$0xff] %vm1840_vm10, %v1838_v59  ;;  %v2740_v59 = vld [vmem:[%s4233_s0] ss:$0 sm:$0xff] }
 0x5c1   : > { %v2009_v60 = vpop.permute.xlu1 %2008 }
 0x5c2   : > { %2012 = vst.msk [vmem:[#allocation2] sm:$0xff] %vm2011_vm11, %v2009_v60 }
 0x5c5   : > { %v2180_v61 = vpop.permute.xlu0 %2179 }
 0x5c6   : > { %2183 = vst.msk [vmem:[#allocation2] sm:$0xff] %vm2182_vm12, %v2180_v61 }
 0x5cd   : > { %v2184_v62 = vld [vmem:[#allocation2] sm:$0xff] }
 0x5ce   : > { %2927 = vmatmul.mubr.msk.f32.vlgmr.msra.gmra.mrb[20].mxu1 %vm660_vm1, %v2184_v62 }
 0x5cf   : > { %2937 = vmatprep.mubr.msk.f32.mxu1 %vm3521_vm0, %v3522_v1  ;;  %v2308_v1 = vld [vmem:[%s4184_s8] sm:$0xff] }
 0x5d0   : > { %v2994_v14 = vpack.c.bf16 %v2309_v13, %v2308_v1 }
 0x5d2   : > { %2995 = vmatpush3.bf16.msra.mxu1 %v2994_v14 }
 0x5d3   : > { %2996 = vmatprep.subr.bf16.mxu1 %v3520_v0  ;;  %v2737_v0 = vld [vmem:[%s4231_s2] ss:$0 sm:$0xff] }
 0x6a1   : > { %v2265_v2 = vpop.f32.mrb[20].mxu1 }
 0x6a2   : > { %v2266_v3 = vadd.f32 %v2734_v63, %v2265_v2  ;;  %v2928_v4 = vpop.f32.mrb[21].mxu1 }
 0x6a4   : > { %v2269_v5 = vadd.f32 %v2266_v3, %v3933_v10  ;;  %v2310_v10 = vld [vmem:[%s4184_s8 + $0x10] sm:$0xff] }
 0x6a5   : > { %v2997_v16 = vpack.c.bf16 %v2311_v15, %v2310_v10  ;;  %v2741_v15 = vld [vmem:[%s4234_s30] ss:$0 sm:$0xff]  ;;  %s3432_s30 = scalar_lea.vmem %s3431_s18, 256 }
 0x6a6   : > { %v2270_v6 = vsel %vm660_vm1, %v2269_v5, 0.0  ;;  %p3434_p6 = scmp.lt.s32.totalorder %s3432_s30, %s3426_s26 }
 0x6a7   : > { %2271 = vadd.xlane.f32.xlu1 %v2270_v6  ;;  %2998 = vmatpush3.bf16.msra.mxu1 %v2997_v16 }
 0x6a8   : > { %p3435_p10 = por %p3434_p6, %p3433_p0 }
 0x6aa   : > { %p3436_p11 = pnand %p3435_p10, %p3429_p2 }
 0x734   : > { %v2272_v7 = vpop.xlane.xlu1 %2271 }
 0x735   : > { %v2274_v8 = vmul.f32 0.03125, %v2272_v7 }
 0x737   : > { %v2275_v9 = vsub.f32 %v2269_v5, %v2274_v8 }
 0x739   : > { %v2276_v11 = vmul.f32 %v2275_v9, %v2275_v9  ;;  %v2296_v47 = vmul.f32 %v2736_v46, %v2275_v9 }
 0x73b   : > { %v2277_v12 = vsel %vm660_vm1, %v2276_v11, 0.0 }
 0x73c   : > { %2278 = vadd.xlane.f32.xlu0 %v2277_v12 }
 0x7c9   : > { %v2279_v38 = vpop.xlane.xlu0 %2278 }
 0x7ca   : > { %v2281_v39 = vmul.f32 0.032258064, %v2279_v38 }
 0x7cc   : > { %3192 = vrsqrt.f32 %v2281_v39  ;;  %vm2284_vm13 = vcmp.eq.f32.partialorder %v2281_v39, inf  ;;  %v2287_v42 = vand.u32 2147483648, %v2281_v39  ;;  %vm2286_vm14 = vcmp.eq.f32.partialorder %v2281_v39, 0.0 }
 0x7d6   : > { %v3193_v40 = vpop.eup %3192 }
 0x7d7   : > { %v2283_v41 = vmul.f32 %v3193_v40, %v2281_v39 }
 0x7d9   : > { %v2285_v43 = vsel %vm2284_vm13, %v2281_v39, %v2283_v41 }
 0x7da   : > { %v2288_v44 = vsel %vm2286_vm14, %v2287_v42, %v2285_v43 }
 0x7db   : > { %v2297_v45 = vadd.f32 1e-06, %v2288_v44 }
 0x7dd   : > { %3194 = vrcp.f32 %v2297_v45 }
 0x7e7   : > { %v3195_v48 = vpop.eup %3194 }
 0x7e8   : > { %v2299_v49 = vmul.f32 %v3195_v48, %v2296_v47 }
 0x7ea   : > { %v2307_v50 = vadd.f32 %v2737_v0, %v2299_v49 }
 0x7ec   : > { %2938 = vmatmul.mubr.msk.f32.vlgmr.msra.gmra.mrb[22].mxu1 %vm660_vm1, %v2307_v50 }
 0x8bf   : > { %v2388_v55 = vpop.f32.mrb[22].mxu1 }
 0x8c0   : > { %v2389_v56 = vadd.f32 %v2738_v54, %v2388_v55  ;;  %v2939_v57 = vpop.f32.mrb[23].mxu1 }
 0x8c2   : > { %v2392_v58 = vmax.f32 %v2389_v56, 0.0 }
 0x8c4   : > { %2973 = vmatmul.mubr.f32.vlgmr.msra.gmra.mrb[16].mxu0 %v2392_v58 }
 0x997   : > { %v2482_v60 = vpop.f32.mrb[16].mxu0 }
 0x998   : > { %v2483_v61 = vadd.f32 %v2740_v59, %v2482_v60  ;;  %v2974_v62 = vpop.f32.mrb[17].mxu0 }
 0x99a   : > { %v2486_v63 = vadd.f32 %v2483_v61, %v2307_v50 }
 0x99c   : > { %v2487_v2 = vsel %vm660_vm1, %v2486_v63, 0.0 }
 0x99d   : > { %2488 = vadd.xlane.f32.xlu0 %v2487_v2 }
 0xa2a   : > { %v2489_v3 = vpop.xlane.xlu0 %2488 }
 0xa2b   : > { %v2490_v4 = vmul.f32 0.03125, %v2489_v3 }
 0xa2d   : > { %v2491_v5 = vsub.f32 %v2486_v63, %v2490_v4 }
 0xa2f   : > { %v2492_v6 = vmul.f32 %v2491_v5, %v2491_v5  ;;  %v2511_v16 = vmul.f32 %v2741_v15, %v2491_v5 }
 0xa31   : > { %v2493_v7 = vsel %vm660_vm1, %v2492_v6, 0.0 }
 0xa32   : > { %2494 = vadd.xlane.f32.xlu1 %v2493_v7 }
 0xabf   : > { %v2495_v8 = vpop.xlane.xlu1 %2494 }
 0xac0   : > { %v2496_v9 = vmul.f32 0.032258064, %v2495_v8 }
 0xac2   : > { %3196 = vrsqrt.f32 %v2496_v9  ;;  %vm2499_vm15 = vcmp.eq.f32.partialorder %v2496_v9, inf  ;;  %v2502_v1 = vand.u32 2147483648, %v2496_v9  ;;  %vm2501_vm0 = vcmp.eq.f32.partialorder %v2496_v9, 0.0 }
 0xacc   : > { %v3197_v11 = vpop.eup %3196 }
 0xacd   : > { %v2498_v12 = vmul.f32 %v3197_v11, %v2496_v9 }
 0xacf   : > { %v2500_v13 = vsel %vm2499_vm15, %v2496_v9, %v2498_v12 }
 0xad0   : > { %v2503_v10 = vsel %vm2501_vm0, %v2502_v1, %v2500_v13 }
 0xad1   : > { %v2512_v14 = vadd.f32 1e-06, %v2503_v10 }
 0xad3   : > { %3198 = vrcp.f32 %v2512_v14 }
 0xadd   : > { %v3199_v17 = vpop.eup %3198 }
 0xade   : > { %v2514_v23 = vmul.f32 %v3199_v17, %v2511_v16 }
 0xae0   : > { %v2522_v19 = vadd.f32 %v2742_v18, %v2514_v23 }
 0xae2   : > { %2523 = vst.msk [vmem:[%s643_s15] sm:$0xff] %vm660_vm1, %v2522_v19 }
 0xae3   : > { %3439 = shalt.err (!%p3436_p11)
}
 0xae4   : > { %s3440_s20 = scalar_lea.hbm %s4131_s3, 128  ;;  %s3444_s14 = scalar_lea.hbm %s4236_s1, 256 }
 0xae5   : > { %p3441_p8 = scmp.ne.s32.totalorder %s4131_s3, %s3440_s20  ;;  %p3445_p7 = scmp.lt.u32.totalorder %s4131_s3, %s4236_s1 }
 0xae6   : > { %p3446_p4 = scmp.lt.u32.totalorder %s3444_s14, %s3440_s20  ;;  %p3448_p13 = scmp.lt.u32.totalorder %s3440_s20, %s4131_s3 }
 0xae7   : > { %p3442_p5 = pnand %p3441_p8, %p4237_p1 }
 0xae8   : > { %p3447_p12 = por %p3446_p4, %p3445_p7 }
 0xae9   : > { %p3443_p9 = pneg %p3442_p5 }
 0xaea   : > { %p3449_p3 = por %p3448_p13, %p3447_p12 }
 0xaec   : > { %p3450_p2 = pnand %p3449_p3, %p3443_p9 }
 0xaee   : > { %3453 = shalt.err (!%p3450_p2)
}
 0xaef   : > { %3053 = dma.vmem_to_hbm [thread:$0]  (%p4237_p1), %s4133_s19, 128, %s4131_s3, %s2525_s13  }
 0xaf0 PF: > { %s2550_s11 = sand.u32 1, %s3496_s21   ;;  %p4238_p0 = scmp.ne.s32.totalorder %s4217_s25, 0 }
 0xaf1   : > { %p4239_p6 = scmp.ge.s32.totalorder %s3508_s24, 2  ;;  %s2551_s0 = scalar_lea.sflag [#allocation5], %s2550_s11 }
 0xaf3   : > { %p3082_p10 = pnand %p4239_p6, %p4238_p0 }
 0xaf5   : > { %3491 = dma.done.wait (!%p3082_p10), %s2551_s0, 128  }
 0xaf6   : > { %3493 = vsyncadd (!%p3082_p10), %s2551_s0, 4294967168  ;;  %p33_p11 = scmp.ge.s32.totalorder %s3830_s29, 4   ;;  %s4240_s21 = smov %s3500_s22 }
 0xaf7   : > { %s4241_s22 = smov %s3504_s23  ;;  %s4242_s23 = smov %s3842_s17 }
 0xaf8   : > { %s4243_s24 = smov %s3830_s29  ;;  %35 = sbr.rel (!%p33_p11) target bundleno = 21 (0x15), region = 160 }
 0xaff   :  { %2556 = vsyncpa [#allocation4], 1 }
 0xb00   :  { %2558 = vsyncpa [#allocation4 + $0x1], 1 }
 0xb01   :  { %2559 = vsyncpa [#allocation7], 1 }
 0xb02   :  { %2560 = vsyncpa [#allocation10], 1 }
 0xb03   :  { %2561 = vsyncpa [#allocation13], 1 }
 0xb04   :  { %2562 = vsyncpa [#allocation16], 1 }
 0xb05   :  { %2563 = vsyncpa [#allocation5], 1 }
 0xb06   :  { %2565 = vsyncpa [#allocation5 + $0x1], 1 }

</bundles_post_ra>
